<compile_context>
chip_gen: v7x
topology: tpu7x:2x2x1
jax: 0.10.0
libtpu: 0.0.40
codegen_flags: <defaults>
</compile_context>

<pallas_src>
import jax
import jax.numpy as jnp
from jax import lax
from jax.experimental import pallas as pl
from jax.experimental.pallas import tpu as pltpu


def _cbow_kernel(idx_ref,    # VMEM (tile_b, n_ctx)   int32  context word ids
                 emb_ref,    # VMEM (Vp, D)           bf16   vocab-padded embedding table
                 w1_ref,     # VMEM (n_ctx*D, H)      bf16
                 b1_ref,     # VMEM (1, H)            f32
                 w2_ref,     # VMEM (H, Vp)           bf16   (zero-padded columns)
                 b2_ref,     # VMEM (1, Vp)           f32    (-1e30 in padded lanes)
                 out_ref,    # VMEM (tile_b, Vp)      f32    log-probabilities
                 x_ref):     # VMEM scratch (tile_b, n_ctx*D) bf16
    tile_b, vp = out_ref.shape
    n_ctx = idx_ref.shape[1]
    d = emb_ref.shape[1]

    idx = idx_ref[...]                                        # (tile_b, n_ctx) i32
    col = lax.broadcasted_iota(jnp.int32, (tile_b, vp), 1)    # vocab lane ids

    # One-hot MXU gather of the n_ctx context embeddings into the flattened
    # (tile_b, n_ctx*D) activation tile (exact: one nonzero term per output row).
    # TODO(synk): for large vocab (v7x 64 MiB VMEM) keep emb/w2 in HBM (pl.ANY) and
    # DMA-gather rows / tile the vocab axis with an online log_softmax instead.
    for c in range(n_ctx):
        onehot = (col == idx[:, c:c + 1]).astype(emb_ref.dtype)   # (tile_b, vp) bf16
        x_ref[:, c * d:(c + 1) * d] = jnp.dot(
            onehot, emb_ref[...], preferred_element_type=jnp.float32
        ).astype(x_ref.dtype)

    # linear1 + ReLU: one fused MXU matmul over K = n_ctx*D (bf16 in, f32 accum).
    h = jnp.dot(x_ref[...], w1_ref[...], preferred_element_type=jnp.float32)
    h = jnp.maximum(h + b1_ref[...], 0.0)

    # linear2 on the lane-dense (128-padded) vocab axis; padded lanes get -1e30 via b2.
    o = jnp.dot(h.astype(w2_ref.dtype), w2_ref[...],
                preferred_element_type=jnp.float32) + b2_ref[...]

    # log_softmax along the vocab (lane) axis.
    m = jnp.max(o, axis=1, keepdims=True)
    lse = m + jnp.log(jnp.sum(jnp.exp(o - m), axis=1, keepdims=True))
    out_ref[...] = o - lse


def cbow_forward(indices, emb, w1, b1, w2, b2, *, tile_b=128):
    """CBOW forward. indices: (n_ctx,) or (B, n_ctx) int word ids.

    emb: (vocab, D) f32; w1: (n_ctx*D, H); b1: (1, H); w2: (H, vocab); b2: (1, vocab).
    Returns (B, vocab) f32 log-probs ((1, vocab) if indices was 1-D), matching the
    PyTorch module's per-example forward.
    """
    single = indices.ndim == 1
    if single:
        indices = indices[None, :]
    B, n_ctx = indices.shape
    vocab, d = emb.shape
    h_dim = w1.shape[1]
    assert w1.shape[0] == n_ctx * d
    assert w2.shape == (h_dim, vocab)

    vp = ((vocab + 127) // 128) * 128            # lane-dense padded vocab
    # Clamp tile_b for small batches (avoid excessive padded-row compute); keep a
    # multiple of 8 sublanes.  TODO(synk): on v7x cap tile_b at bp//2 for mid-size
    # batches so the "parallel" batch grid has >= 2 steps for both TensorCores.
    tile_b = max(8, min(tile_b, ((B + 7) // 8) * 8))
    bp = ((B + tile_b - 1) // tile_b) * tile_b   # batch padded to tile

    # Host-side packing / padding / dtype casts.
    idx_p = jnp.zeros((bp, n_ctx), jnp.int32).at[:B].set(indices.astype(jnp.int32))
    emb_p = jnp.zeros((vp, d), jnp.float32).at[:vocab].set(emb).astype(jnp.bfloat16)
    w1_bf = w1.astype(jnp.bfloat16)
    b1_r = jnp.reshape(b1, (1, h_dim)).astype(jnp.float32)
    w2_p = jnp.zeros((h_dim, vp), jnp.float32).at[:, :vocab].set(w2).astype(jnp.bfloat16)
    # -1e30 in the padded lanes of b2 masks them out of the log_softmax for free
    # (padded w2 columns are zero, so o = 0 + (-1e30) there).
    b2_p = jnp.full((1, vp), -1e30, jnp.float32).at[:, :vocab].set(
        jnp.reshape(b2, (1, vocab)).astype(jnp.float32))

    out = pl.pallas_call(
        _cbow_kernel,
        out_shape=jax.ShapeDtypeStruct((bp, vp), jnp.float32),
        grid_spec=pltpu.PrefetchScalarGridSpec(
            num_scalar_prefetch=0,
            grid=(bp // tile_b,),
            in_specs=[
                pl.BlockSpec((tile_b, n_ctx), lambda i: (i, 0)),          # indices
                pl.BlockSpec((vp, d), lambda i: (0, 0)),                  # emb (padded)
                pl.BlockSpec((n_ctx * d, h_dim), lambda i: (0, 0)),       # w1
                pl.BlockSpec((1, h_dim), lambda i: (0, 0)),               # b1
                pl.BlockSpec((h_dim, vp), lambda i: (0, 0)),              # w2
                pl.BlockSpec((1, vp), lambda i: (0, 0)),                  # b2 (-1e30 pad)
            ],
            out_specs=pl.BlockSpec((tile_b, vp), lambda i: (i, 0)),
            scratch_shapes=[pltpu.VMEM((tile_b, n_ctx * d), jnp.bfloat16)],
        ),
        compiler_params=pltpu.CompilerParams(
            dimension_semantics=("parallel",),   # batch axis -> both TCs on v7x
        ),
    )(idx_p, emb_p, w1_bf, b1_r, w2_p, b2_p)

    return out[:B, :vocab]


def cbow_reference(indices, emb, w1, b1, w2, b2):
    # Pure-JAX, f32, batched reference of the PyTorch module's forward.
    embeds = emb[indices].reshape(indices.shape[0], -1)
    h = jnp.maximum(embeds @ w1 + jnp.reshape(b1, (1, -1)), 0.0)
    o = h @ w2 + jnp.reshape(b2, (1, -1))
    return o - jax.scipy.special.logsumexp(o, axis=1, keepdims=True)


if __name__ == "__main__":
    # Small shapes consistent with the module's forward.
    vocab_size = 64
    embedding_dim = 16
    context_size = 2
    n_ctx = 2 * context_size          # linear1 in_features = context_size * emb_dim * 2
    hidden = 128
    batch = 256                        # 2 grid steps at tile_b=128

    key = jax.random.PRNGKey(0)
    k_emb, k_w1, k_b1, k_w2, k_b2, k_idx = jax.random.split(key, 6)

    emb = jax.random.normal(k_emb, (vocab_size, embedding_dim), jnp.float32)
    # PyTorch Linear weight is (out, in); store transposed (in, out) for the kernel.
    w1 = jax.random.normal(k_w1, (n_ctx * embedding_dim, hidden), jnp.float32) * 0.1
    b1 = jax.random.normal(k_b1, (1, hidden), jnp.float32) * 0.1
    w2 = jax.random.normal(k_w2, (hidden, vocab_size), jnp.float32) * 0.1
    b2 = jax.random.normal(k_b2, (1, vocab_size), jnp.float32) * 0.1

    indices = jax.random.randint(k_idx, (batch, n_ctx), 0, vocab_size, jnp.int32)

    # Batched forward through the Pallas kernel.
    out = jax.block_until_ready(cbow_forward(indices, emb, w1, b1, w2, b2, tile_b=128))
    assert out.shape == (batch, vocab_size)

    # f32 reference; bf16 weights/table inside the kernel => loosened tolerance.
    ref = cbow_reference(indices, emb, w1, b1, w2, b2)
    assert jnp.allclose(out, ref, atol=5e-2, rtol=5e-2), float(jnp.max(jnp.abs(out - ref)))

    # Single-example path == the original module's forward signature: (n_ctx,) -> (1, vocab).
    out1 = jax.block_until_ready(cbow_forward(indices[0], emb, w1, b1, w2, b2))
    assert out1.shape == (1, vocab_size)
    assert jnp.allclose(out1, ref[0:1], atol=5e-2, rtol=5e-2)

    print("KERNEL_OK")
</pallas_src>

<mosaic_0001>
module attributes {stable_mosaic.version = 11 : i64} {
  func.func @_cbow_kernel(%arg0: i32, %arg1: memref<128x4xi32, #tpu.memory_space<vmem>>, %arg2: memref<128x16xbf16, #tpu.memory_space<vmem>>, %arg3: memref<64x128xbf16, #tpu.memory_space<vmem>>, %arg4: memref<1x128xf32, #tpu.memory_space<vmem>>, %arg5: memref<128x128xbf16, #tpu.memory_space<vmem>>, %arg6: memref<1x128xf32, #tpu.memory_space<vmem>>, %arg7: memref<128x128xf32, #tpu.memory_space<vmem>>, %arg8: memref<128x64xbf16, #tpu.memory_space<vmem>>) attributes {dimension_semantics = [#tpu.dimension_semantics<parallel>], iteration_bounds = array<i64: 2>, scalar_prefetch = 0 : i64, scratch_operands = 1 : i64, tpu.core_type = #tpu.core_type<tc>, window_params = [{transform_indices = @transform_0, window_bounds = array<i64: 128, 4>}, {pipeline_mode = #tpu.pipeline_mode<synchronous>, transform_indices = @transform_1, window_bounds = array<i64: 128, 16>}, {pipeline_mode = #tpu.pipeline_mode<synchronous>, transform_indices = @transform_2, window_bounds = array<i64: 64, 128>}, {pipeline_mode = #tpu.pipeline_mode<synchronous>, transform_indices = @transform_3, window_bounds = array<i64: 1, 128>}, {pipeline_mode = #tpu.pipeline_mode<synchronous>, transform_indices = @transform_4, window_bounds = array<i64: 128, 128>}, {pipeline_mode = #tpu.pipeline_mode<synchronous>, transform_indices = @transform_5, window_bounds = array<i64: 1, 128>}, {transform_indices = @transform_6, window_bounds = array<i64: 128, 128>}]} {
    %c0 = arith.constant 0 : index
    %c0_0 = arith.constant 0 : index
    %0 = vector.load %arg1[%c0, %c0_0] : memref<128x4xi32, #tpu.memory_space<vmem>>, vector<128x4xi32>
    %1 = tpu.iota {dimensions = array<i32: 1>} : vector<128x128xi32>
    %2 = vector.extract_strided_slice %0 {offsets = [0, 0], sizes = [128, 1], strides = [1, 1]} : vector<128x4xi32> to vector<128x1xi32>
    %3 = vector.broadcast %2 : vector<128x1xi32> to vector<128x128xi32>
    %4 = arith.cmpi eq, %1, %3 : vector<128x128xi32>
    %5 = arith.extui %4 : vector<128x128xi1> to vector<128x128xi32>
    %6 = arith.sitofp %5 : vector<128x128xi32> to vector<128x128xf32>
    %7 = arith.truncf %6 : vector<128x128xf32> to vector<128x128xbf16>
    %c0_1 = arith.constant 0 : index
    %c0_2 = arith.constant 0 : index
    %8 = vector.load %arg2[%c0_1, %c0_2] : memref<128x16xbf16, #tpu.memory_space<vmem>>, vector<128x16xbf16>
    %cst = arith.constant dense<0.000000e+00> : vector<128x16xf32>
    %9 = tpu.matmul %7, %8, %cst {dimension_numbers = #tpu.dot_dimension_numbers<[1], [0], [0], [1], [0, 0, 1, 1], [], []>} : vector<128x128xbf16>, vector<128x16xbf16>, vector<128x16xf32> -> vector<128x16xf32>
    %10 = arith.truncf %9 : vector<128x16xf32> to vector<128x16xbf16>
    %c0_3 = arith.constant 0 : index
    %c0_4 = arith.constant 0 : index
    %11 = vector.load %arg8[%c0_3, %c0_4] : memref<128x64xbf16, #tpu.memory_space<vmem>>, vector<128x16xbf16>
    tpu.vector_store %arg8[%c0_3, %c0_4], %10 {strides = array<i32>} : memref<128x64xbf16, #tpu.memory_space<vmem>>, vector<128x16xbf16>,
    %12 = vector.extract_strided_slice %0 {offsets = [0, 1], sizes = [128, 1], strides = [1, 1]} : vector<128x4xi32> to vector<128x1xi32>
    %13 = vector.broadcast %12 : vector<128x1xi32> to vector<128x128xi32>
    %14 = arith.cmpi eq, %1, %13 : vector<128x128xi32>
    %15 = arith.extui %14 : vector<128x128xi1> to vector<128x128xi32>
    %16 = arith.sitofp %15 : vector<128x128xi32> to vector<128x128xf32>
    %17 = arith.truncf %16 : vector<128x128xf32> to vector<128x128xbf16>
    %c0_5 = arith.constant 0 : index
    %c0_6 = arith.constant 0 : index
    %18 = vector.load %arg2[%c0_5, %c0_6] : memref<128x16xbf16, #tpu.memory_space<vmem>>, vector<128x16xbf16>
    %cst_7 = arith.constant dense<0.000000e+00> : vector<128x16xf32>
    %19 = tpu.matmul %17, %18, %cst_7 {dimension_numbers = #tpu.dot_dimension_numbers<[1], [0], [0], [1], [0, 0, 1, 1], [], []>} : vector<128x128xbf16>, vector<128x16xbf16>, vector<128x16xf32> -> vector<128x16xf32>
    %20 = arith.truncf %19 : vector<128x16xf32> to vector<128x16xbf16>
    %c0_8 = arith.constant 0 : index
    %c16 = arith.constant 16 : index
    %21 = vector.load %arg8[%c0_8, %c16] : memref<128x64xbf16, #tpu.memory_space<vmem>>, vector<128x16xbf16>
    tpu.vector_store %arg8[%c0_8, %c16], %20 {strides = array<i32>} : memref<128x64xbf16, #tpu.memory_space<vmem>>, vector<128x16xbf16>,
    %22 = vector.extract_strided_slice %0 {offsets = [0, 2], sizes = [128, 1], strides = [1, 1]} : vector<128x4xi32> to vector<128x1xi32>
    %23 = vector.broadcast %22 : vector<128x1xi32> to vector<128x128xi32>
    %24 = arith.cmpi eq, %1, %23 : vector<128x128xi32>
    %25 = arith.extui %24 : vector<128x128xi1> to vector<128x128xi32>
    %26 = arith.sitofp %25 : vector<128x128xi32> to vector<128x128xf32>
    %27 = arith.truncf %26 : vector<128x128xf32> to vector<128x128xbf16>
    %c0_9 = arith.constant 0 : index
    %c0_10 = arith.constant 0 : index
    %28 = vector.load %arg2[%c0_9, %c0_10] : memref<128x16xbf16, #tpu.memory_space<vmem>>, vector<128x16xbf16>
    %cst_11 = arith.constant dense<0.000000e+00> : vector<128x16xf32>
    %29 = tpu.matmul %27, %28, %cst_11 {dimension_numbers = #tpu.dot_dimension_numbers<[1], [0], [0], [1], [0, 0, 1, 1], [], []>} : vector<128x128xbf16>, vector<128x16xbf16>, vector<128x16xf32> -> vector<128x16xf32>
    %30 = arith.truncf %29 : vector<128x16xf32> to vector<128x16xbf16>
    %c0_12 = arith.constant 0 : index
    %c32 = arith.constant 32 : index
    %31 = vector.load %arg8[%c0_12, %c32] : memref<128x64xbf16, #tpu.memory_space<vmem>>, vector<128x16xbf16>
    tpu.vector_store %arg8[%c0_12, %c32], %30 {strides = array<i32>} : memref<128x64xbf16, #tpu.memory_space<vmem>>, vector<128x16xbf16>,
    %32 = vector.extract_strided_slice %0 {offsets = [0, 3], sizes = [128, 1], strides = [1, 1]} : vector<128x4xi32> to vector<128x1xi32>
    %33 = vector.broadcast %32 : vector<128x1xi32> to vector<128x128xi32>
    %34 = arith.cmpi eq, %1, %33 : vector<128x128xi32>
    %35 = arith.extui %34 : vector<128x128xi1> to vector<128x128xi32>
    %36 = arith.sitofp %35 : vector<128x128xi32> to vector<128x128xf32>
    %37 = arith.truncf %36 : vector<128x128xf32> to vector<128x128xbf16>
    %c0_13 = arith.constant 0 : index
    %c0_14 = arith.constant 0 : index
    %38 = vector.load %arg2[%c0_13, %c0_14] : memref<128x16xbf16, #tpu.memory_space<vmem>>, vector<128x16xbf16>
    %cst_15 = arith.constant dense<0.000000e+00> : vector<128x16xf32>
    %39 = tpu.matmul %37, %38, %cst_15 {dimension_numbers = #tpu.dot_dimension_numbers<[1], [0], [0], [1], [0, 0, 1, 1], [], []>} : vector<128x128xbf16>, vector<128x16xbf16>, vector<128x16xf32> -> vector<128x16xf32>
    %40 = arith.truncf %39 : vector<128x16xf32> to vector<128x16xbf16>
    %c0_16 = arith.constant 0 : index
    %c48 = arith.constant 48 : index
    %41 = vector.load %arg8[%c0_16, %c48] : memref<128x64xbf16, #tpu.memory_space<vmem>>, vector<128x16xbf16>
    tpu.vector_store %arg8[%c0_16, %c48], %40 {strides = array<i32>} : memref<128x64xbf16, #tpu.memory_space<vmem>>, vector<128x16xbf16>,
    %c0_17 = arith.constant 0 : index
    %c0_18 = arith.constant 0 : index
    %42 = vector.load %arg8[%c0_17, %c0_18] : memref<128x64xbf16, #tpu.memory_space<vmem>>, vector<128x64xbf16>
    %c0_19 = arith.constant 0 : index
    %c0_20 = arith.constant 0 : index
    %43 = vector.load %arg3[%c0_19, %c0_20] : memref<64x128xbf16, #tpu.memory_space<vmem>>, vector<64x128xbf16>
    %cst_21 = arith.constant dense<0.000000e+00> : vector<128x128xf32>
    %44 = tpu.matmul %42, %43, %cst_21 {dimension_numbers = #tpu.dot_dimension_numbers<[1], [0], [0], [1], [0, 0, 1, 1], [], []>} : vector<128x64xbf16>, vector<64x128xbf16>, vector<128x128xf32> -> vector<128x128xf32>
    %c0_22 = arith.constant 0 : index
    %c0_23 = arith.constant 0 : index
    %45 = vector.load %arg4[%c0_22, %c0_23] : memref<1x128xf32, #tpu.memory_space<vmem>>, vector<1x128xf32>
    %46 = vector.broadcast %45 : vector<1x128xf32> to vector<128x128xf32>
    %47 = arith.addf %44, %46 : vector<128x128xf32>
    %cst_24 = arith.constant 0.000000e+00 : f32
    %48 = vector.broadcast %cst_24 : f32 to vector<128x128xf32>
    %49 = arith.maximumf %47, %48 : vector<128x128xf32>
    %50 = arith.truncf %49 : vector<128x128xf32> to vector<128x128xbf16>
    %c0_25 = arith.constant 0 : index
    %c0_26 = arith.constant 0 : index
    %51 = vector.load %arg5[%c0_25, %c0_26] : memref<128x128xbf16, #tpu.memory_space<vmem>>, vector<128x128xbf16>
    %cst_27 = arith.constant dense<0.000000e+00> : vector<128x128xf32>
    %52 = tpu.matmul %50, %51, %cst_27 {dimension_numbers = #tpu.dot_dimension_numbers<[1], [0], [0], [1], [0, 0, 1, 1], [], []>} : vector<128x128xbf16>, vector<128x128xbf16>, vector<128x128xf32> -> vector<128x128xf32>
    %c0_28 = arith.constant 0 : index
    %c0_29 = arith.constant 0 : index
    %53 = vector.load %arg6[%c0_28, %c0_29] : memref<1x128xf32, #tpu.memory_space<vmem>>, vector<1x128xf32>
    %54 = vector.broadcast %53 : vector<1x128xf32> to vector<128x128xf32>
    %55 = arith.addf %52, %54 : vector<128x128xf32>
    %cst_30 = arith.constant dense<0xFF800000> : vector<128xf32>
    %56 = vector.multi_reduction <maximumf>, %55, %cst_30 [1] : vector<128x128xf32> to vector<128xf32>
    %57 = vector.shape_cast %56 : vector<128xf32> to vector<128x1xf32>
    %58 = vector.broadcast %57 : vector<128x1xf32> to vector<128x128xf32>
    %59 = arith.subf %55, %58 : vector<128x128xf32>
    %60 = math.exp %59 : vector<128x128xf32>
    %cst_31 = arith.constant dense<0.000000e+00> : vector<128xf32>
    %61 = vector.multi_reduction <add>, %60, %cst_31 [1] : vector<128x128xf32> to vector<128xf32>
    %62 = vector.shape_cast %61 : vector<128xf32> to vector<128x1xf32>
    %63 = math.log %62 : vector<128x1xf32>
    %64 = arith.addf %57, %63 : vector<128x1xf32>
    %65 = vector.broadcast %64 : vector<128x1xf32> to vector<128x128xf32>
    %66 = arith.subf %55, %65 : vector<128x128xf32>
    %c0_32 = arith.constant 0 : index
    %c0_33 = arith.constant 0 : index
    %67 = vector.load %arg7[%c0_32, %c0_33] : memref<128x128xf32, #tpu.memory_space<vmem>>, vector<128x128xf32>
    tpu.vector_store %arg7[%c0_32, %c0_33], %66 {strides = array<i32>} : memref<128x128xf32, #tpu.memory_space<vmem>>, vector<128x128xf32>,
    return
  }
  func.func @transform_0(%arg0: i32) -> (i32, i32) {
    %c0_i32 = arith.constant 0 : i32
    %c0_i32_0 = arith.constant 0 : i32
    return %arg0, %c0_i32 : i32, i32
  }
  func.func @transform_1(%arg0: i32) -> (i32, i32) {
    %c0_i32 = arith.constant 0 : i32
    %c0_i32_0 = arith.constant 0 : i32
    %c0_i32_1 = arith.constant 0 : i32
    return %c0_i32, %c0_i32_0 : i32, i32
  }
  func.func @transform_2(%arg0: i32) -> (i32, i32) {
    %c0_i32 = arith.constant 0 : i32
    %c0_i32_0 = arith.constant 0 : i32
    %c0_i32_1 = arith.constant 0 : i32
    return %c0_i32, %c0_i32_0 : i32, i32
  }
  func.func @transform_3(%arg0: i32) -> (i32, i32) {
    %c0_i32 = arith.constant 0 : i32
    %c0_i32_0 = arith.constant 0 : i32
    %c0_i32_1 = arith.constant 0 : i32
    return %c0_i32, %c0_i32_0 : i32, i32
  }
  func.func @transform_4(%arg0: i32) -> (i32, i32) {
    %c0_i32 = arith.constant 0 : i32
    %c0_i32_0 = arith.constant 0 : i32
    %c0_i32_1 = arith.constant 0 : i32
    return %c0_i32, %c0_i32_0 : i32, i32
  }
  func.func @transform_5(%arg0: i32) -> (i32, i32) {
    %c0_i32 = arith.constant 0 : i32
    %c0_i32_0 = arith.constant 0 : i32
    %c0_i32_1 = arith.constant 0 : i32
    return %c0_i32, %c0_i32_0 : i32, i32
  }
  func.func @transform_6(%arg0: i32) -> (i32, i32) {
    %c0_i32 = arith.constant 0 : i32
    %c0_i32_0 = arith.constant 0 : i32
    return %arg0, %c0_i32 : i32, i32
  }
}

</mosaic_0001>

<bundles_post_ra>
// kernel: tpu_custom_call.1
= control target key start
LH: loop header
LB: loop body
LE: loop exit
PB: predicated region body
PF: predicated region fallthrough
CT: control target
= control target key end

     0   :  { %11 = vsyncpa [#allocation4], 0  ;;  %s3593_s0 = inlined_call_operand.vmem [shape: s32[256,4], index: 0, kind: input, shape index: {}]   ;;  %s3594_s1 = inlined_call_operand.vmem [shape: bf16[128,16], index: 1, kind: input, shape index: {}]   ;;  %s3595_s2 = inlined_call_operand.vmem [shape: bf16[64,128], index: 2, kind: input, shape index: {}]   ;;  %s3596_s3 = inlined_call_operand.vmem [shape: f32[1,128], index: 3, kind: input, shape index: {}]   ;;  %s3597_s4 = inlined_call_operand.vmem [shape: bf16[128,128], index: 4, kind: input, shape index: {}]   ;;  %s3598_s5 = inlined_call_operand.vmem [shape: f32[1,128], index: 5, kind: input, shape index: {}]   ;;  %s3599_s6 = inlined_call_operand.hbm [shape: f32[256,128], index: 6, kind: output, shape index: {}]  }
   0x1   :  { %13 = vsyncpa [#allocation4 + $0x1], 0  ;;  %s2883_s21 = smov 0   ;;  %s2885_s22 = smov 0  }
   0x2   :  { %s2887_s23 = smov 0   ;;  %s2889_s24 = smov 0  }
   0x3 LB: > { %s2904_s25 = sadd.s32 4294967295, %s2835_s24   ;;  %s2125_s26 = sadd.s32 4294967294, %s2835_s24   ;;  %s2835_s24 = sphi %s2889_s24, %s3605_s24   ;;  %s2831_s23 = sphi %s2887_s23, %s3604_s23   ;;  %s2827_s22 = sphi %s2885_s22, %s3603_s22   ;;  %s2823_s21 = sphi %s2883_s21, %s3602_s21  }
   0x4   : > { %s2908_s27 = sadd.s32 1, %s2835_s24   ;;  %s157_s28 = sadd.s32 1, %s2831_s23 }
   0x5   : > { %s154_s29 = ssub.s32 %s2835_s24, %s2908_s27  ;;  %p167_p0 = scmp.ne.s32.totalorder %s2831_s23, %s2827_s22 }
   0x6   : > { %p155_p1 = scmp.eq.s32.totalorder %s154_s29, 0  ;;  %p168_p2 = scmp.eq.s32.totalorder %s2904_s25, 1 }
   0x7   : > { %p173_p3 = scmp.ne.s32.totalorder %s2827_s22, %s2823_s21  ;;  %p174_p4 = scmp.eq.s32.totalorder %s2125_s26, 1 }
   0x8   : > { %s2919_s30 = scalar_select %p155_p1, %s2831_s23, %s157_s28  }
   0x9   : > { %p2921_p5 = por %p168_p2, %p167_p0  ;;  %p2925_p6 = por %p174_p4, %p173_p3 }
   0xa   : > { %p2128_p7 = scmp.ge.s32.totalorder %s2835_s24, 1  ;;  %p216_p8 = scmp.lt.s32.totalorder %s2835_s24, 3 }
   0xc   : > { %p217_p9 = pnand %p2128_p7, %p216_p8 }
   0xd   : > { %s2130_s9 = sshll.u32 (!%p217_p9), %s2904_s25, 4  ;;  %v2665_v0 = vld [vmem:[%s3594_s1] sm:$0xff] (!%p217_p9)   ;;  %v2837_v1 = vmov (!%p217_p9), 0   ;;  %v2666_v2 = vld [vmem:[%s3594_s1 + $0x8] sm:$0xff] (!%p217_p9)   ;;  %v2667_v3 = vld [vmem:[%s3594_s1 + $0x10] sm:$0xff] (!%p217_p9)   ;;  %v2838_v14 = vmov (!%p217_p9), 1   ;;  %v270_v38 = vlaneseq (!%p217_p9) }
   0xe   : > { %220 = sbr.rel (%p217_p9) target bundleno = 1437 (0x59d), region = 44  ;;  %2646 = vset.pattern.permute.xlu1 (!%p217_p9), %v2837_v1  ;;  %2645 = vset.pattern.permute.xlu0 (!%p217_p9), %v2837_v1  ;;  %p247_p10 = scmp.lt.s32.totalorder (!%p217_p9), %s2130_s9, 31  ;;  %v2668_v8 = vld [vmem:[%s3594_s1 + $0x18] sm:$0xff] (!%p217_p9)   ;;  %v2669_v9 = vld [vmem:[%s3594_s1 + $0x20] sm:$0xff] (!%p217_p9)   ;;  %v2673_v12 = vld [vmem:[%s3594_s1 + $0x8] sm:$0xff] (!%p217_p9)   ;;  %v2839_v33 = vmov (!%p217_p9), 2  }
   0xf   : > { %2412 = vmatprep.subr.bf16.mxu0 (!%p217_p9), %v2665_v0  ;;  %v2671_v10 = vld [vmem:[%s3594_s1] sm:$0xff] (!%p217_p9)   ;;  %v2670_v13 = vld [vmem:[%s3594_s1 + $0x28] sm:$0xff] (!%p217_p9)   ;;  %v2675_v16 = vld [vmem:[%s3594_s1 + $0x10] sm:$0xff] (!%p217_p9)   ;;  %v2840_v36 = vmov (!%p217_p9), 3   ;;  %v3108_v41 = vand.u32 (!%p217_p9), 127, %v270_v38  ;;  %s2842_s20 = smov (!%p217_p9), 16  }
  0x10   : > { %2413 = vmatpush3.bf16.msra.mxu0 (!%p217_p9), %v2665_v0  ;;  %2444 = vmatprep.subr.bf16.mxu1 (!%p217_p9), %v2671_v10  ;;  %v2672_v18 = vld [vmem:[%s3594_s1 + $0x30] sm:$0xff] (!%p217_p9)   ;;  %v2676_v20 = vld [vmem:[%s3594_s1 + $0x18] sm:$0xff] (!%p217_p9)   ;;  %v2677_v22 = vld [vmem:[%s3594_s1 + $0x20] sm:$0xff] (!%p217_p9)   ;;  %v2841_v45 = vmov (!%p217_p9), 1.0|1.0   ;;  %s2843_s13 = smov (!%p217_p9), 32  }
  0x11   : > { %2414 = vmatprep.subr.bf16.mxu0 (!%p217_p9), %v2666_v2  ;;  %2445 = vmatpush3.bf16.msra.mxu1 (!%p217_p9), %v2671_v10  ;;  %v2674_v21 = vld [vmem:[%s3594_s1 + $0x38] sm:$0xff] (!%p217_p9)   ;;  %v2678_v24 = vld [vmem:[%s3594_s1 + $0x28] sm:$0xff] (!%p217_p9)   ;;  %v2679_v26 = vld [vmem:[%s3594_s1 + $0x30] sm:$0xff] (!%p217_p9)   ;;  %s243_s26 = sand.u32 (!%p217_p9), 1, %s2827_s22   ;;  %s2319_s29 = sshll.u32 (!%p217_p9), %s2904_s25, 11 }
  0x12   : > { %2446 = vmatprep.subr.bf16.mxu1 (!%p217_p9), %v2673_v12  ;;  %v2680_v27 = vld [vmem:[%s3594_s1 + $0x38] sm:$0xff] (!%p217_p9)   ;;  %v2681_v34 = vld [vmem:[%s3594_s1] sm:$0xff] (!%p217_p9)   ;;  %v2682_v44 = vld [vmem:[%s3594_s1 + $0x8] sm:$0xff] (!%p217_p9)   ;;  %s3543_s12 = scalar_lea.hbm (!%p217_p9), %s3599_s6, %s2319_s29  ;;  %s3552_s25 = scalar_lea.sflag (!%p217_p9), [#allocation4], %s243_s26 }
  0x13   : > { %v3080_v37 = vld [vmem:[%s3594_s1] sm:$0xff] (!%p217_p9)   ;;  %v2683_v48 = vld [vmem:[%s3594_s1 + $0x10] sm:$0xff] (!%p217_p9)   ;;  %v2685_v51 = vld [vmem:[%s3594_s1 + $0x18] sm:$0xff] (!%p217_p9)  }
  0x14   : > { %2415 = vmatpush3.bf16.msra.mxu0 (!%p217_p9), %v2666_v2  ;;  %v2687_v54 = vld [vmem:[%s3594_s1 + $0x20] sm:$0xff] (!%p217_p9)   ;;  %v2689_v57 = vld [vmem:[%s3594_s1 + $0x28] sm:$0xff] (!%p217_p9)   ;;  %v2691_v61 = vld [vmem:[%s3594_s1 + $0x30] sm:$0xff] (!%p217_p9)  }
  0x15   : > { %s3607_s9 = smov (!%p247_p10, %s2130_s9), 31  ;;  %2416 = vmatprep.subr.bf16.mxu0 %v2667_v3  ;;  %2447 = vmatpush3.bf16.msra.mxu1 %v2673_v12  ;;  %v2686_v60 = vld [vmem:[%s3594_s1 + $0x8] sm:$0xff]   ;;  %v2688_v63 = vld [vmem:[%s3594_s1 + $0x10] sm:$0xff]   ;;  %v2696_v12 = vld [vmem:[%s3594_s1 + $0x38] sm:$0xff]  }
  0x16   : > { %s2131_s14 = sshll.u32 %s3607_s9, 3  ;;  %2448 = vmatprep.subr.bf16.mxu1 %v2675_v16  ;;  %v2695_v10 = vld [vmem:[%s3594_s1 + $0x30] sm:$0xff]  }
  0x17   : > { %s2946_s19 = scalar_lea.vmem %s3593_s0, %s2131_s14  ;;  %s2844_s14 = smov 48  }
  0x18   : > { %v2949_v4 = vld [vmem:[%s2946_s19 + $0x10] sm:$0xff]  ;;  %v2952_v5 = vld [vmem:[%s2946_s19] sm:$0xff]  ;;  %v2957_v6 = vld [vmem:[%s2946_s19 + $0x18] sm:$0xff]  ;;  %2417 = vmatpush3.bf16.msra.mxu0 %v2667_v3 }
  0x19   : > { %279 = vperm.xlu1 %2646, %v2949_v4   ;;  %273 = vperm.xlu0 %2645, %v2952_v5   ;;  %v2960_v7 = vld [vmem:[%s2946_s19 + $0x8] sm:$0xff]  ;;  %v3000_v19 = vld [vmem:[%s2946_s19 + $0x20] sm:$0xff]  ;;  %v3014_v23 = vld [vmem:[%s2946_s19 + $0x30] sm:$0xff] }
  0x1a   : > { %v2974_v11 = vld [vmem:[%s2946_s19 + $0x28] sm:$0xff]  ;;  %2418 = vmatprep.subr.bf16.mxu0 %v2668_v8  ;;  %2449 = vmatpush3.bf16.msra.mxu1 %v2675_v16  ;;  %v3023_v25 = vld [vmem:[%s2946_s19 + $0x38] sm:$0xff]  ;;  %v262_v28 = vld [vmem:[%s2946_s19 + $0x40] sm:$0xff] }
  0x1b   : > { %v2985_v15 = vld [vmem:[%s2946_s19 + $0x48] sm:$0xff]  ;;  %2450 = vmatprep.subr.bf16.mxu1 %v2676_v20  ;;  %v3042_v29 = vld [vmem:[%s2946_s19 + $0x58] sm:$0xff]  ;;  %v3045_v30 = vld [vmem:[%s2946_s19 + $0x50] sm:$0xff] }
  0x1c   : > { %2419 = vmatpush3.bf16.msra.mxu0 %v2668_v8  ;;  %v2992_v17 = vld [vmem:[%s2946_s19 + $0x68] sm:$0xff]  ;;  %v3050_v31 = vld [vmem:[%s2946_s19 + $0x60] sm:$0xff]  ;;  %v3055_v32 = vld [vmem:[%s2946_s19 + $0x78] sm:$0xff] }
  0x1d   : > { %282 = vperm.xlu1 %2646, %v2957_v6   ;;  %276 = vperm.xlu0 %2645, %v2960_v7   ;;  %v3071_v35 = vld [vmem:[%s2946_s19 + $0x70] sm:$0xff]  ;;  %v2690_v3 = vld [vmem:[%s3594_s1 + $0x18] sm:$0xff]   ;;  %s2129_s19 = sshll.u32 %s243_s26, 7 }
  0x1e   : > { %2420 = vmatprep.subr.bf16.mxu0 %v2669_v9  ;;  %2451 = vmatpush3.bf16.msra.mxu1 %v2676_v20  ;;  %s3493_s28 = scalar_lea.vmem [#allocation3], %s2129_s19 }
  0x1f   : > { %2452 = vmatprep.subr.bf16.mxu1 %v2677_v22  ;;  %s2063_s9 = sshll.u32 %s3493_s28, 4  ;;  %s3545_s9 = int_to_ptr.vmem [resolvable:$true] %s2063_s9 }
  0x20   : > { %2421 = vmatpush3.bf16.msra.mxu0 %v2669_v9 }
  0x21   : > { %2647 = vset.pattern.permute.xlu1 %v2838_v14  ;;  %288 = vperm.xlu0 %2645, %v2974_v11  }
  0x22   : > { %558 = vperm.xlu1 %2647, %v2960_v7   ;;  %2422 = vmatprep.subr.bf16.mxu0 %v2670_v13 }
  0x23   : > { %2453 = vmatpush3.bf16.msra.mxu1 %v2677_v22 }
  0x24   : > { %2423 = vmatpush3.bf16.msra.mxu0 %v2670_v13  ;;  %2454 = vmatprep.subr.bf16.mxu1 %v2678_v24 }
  0x25   : > { %300 = vperm.xlu0 %2645, %v2985_v15   ;;  %2424 = vmatprep.subr.bf16.mxu0 %v2672_v18 }
  0x26   : > { %561 = vperm.xlu1 %2647, %v2949_v4  }
  0x27   : > { %2455 = vmatpush3.bf16.msra.mxu1 %v2678_v24 }
  0x28   : > { %2425 = vmatpush3.bf16.msra.mxu0 %v2672_v18  ;;  %2456 = vmatprep.subr.bf16.mxu1 %v2679_v26 }
  0x29   : > { %312 = vperm.xlu0 %2645, %v2992_v17   ;;  %2426 = vmatprep.subr.bf16.mxu0 %v2674_v21 }
  0x2a   : > { %2648 = vset.pattern.permute.xlu1 %v2837_v1 }
  0x2b   : > { %285 = vperm.xlu1 %2648, %v3000_v19   ;;  %2457 = vmatpush3.bf16.msra.mxu1 %v2679_v26 }
  0x2c   : > { %2427 = vmatpush3.bf16.msra.mxu0 %v2674_v21  ;;  %2458 = vmatprep.subr.bf16.mxu1 %v2680_v27 }
  0x2d   : > { %2653 = vset.pattern.permute.xlu0 %v2838_v14  ;;  %2476 = vmatprep.subr.bf16.mxu0 %v2681_v34 }
  0x2e   : > { %555 = vperm.xlu0 %2653, %v2952_v5  }
  0x2f   : > { %291 = vperm.xlu1 %2648, %v3014_v23   ;;  %2459 = vmatpush3.bf16.msra.mxu1 %v2680_v27 }
  0x30   : > { %2508 = vmatprep.subr.bf16.mxu1 %v3080_v37 }
  0x32   : > { %564 = vperm.xlu0 %2653, %v2957_v6  }
  0x33   : > { %294 = vperm.xlu1 %2648, %v3023_v25  }
  0x36   : > { %567 = vperm.xlu0 %2653, %v3000_v19  }
  0x37   : > { %2649 = vset.pattern.permute.xlu1 %v2838_v14 }
  0x38   : > { %570 = vperm.xlu1 %2649, %v2974_v11  }
  0x3a   : > { %576 = vperm.xlu0 %2653, %v3023_v25  }
  0x3c   : > { %573 = vperm.xlu1 %2649, %v3014_v23  }
  0x3e   : > { %579 = vperm.xlu0 %2653, %v262_v28  }
  0x40   : > { %2650 = vset.pattern.permute.xlu1 %v2837_v1 }
  0x41   : > { %297 = vperm.xlu1 %2650, %v262_v28  }
  0x42   : > { %588 = vperm.xlu0 %2653, %v3042_v29  }
  0x45   : > { %303 = vperm.xlu1 %2650, %v3045_v30  }
  0x46   : > { %591 = vperm.xlu0 %2653, %v3050_v31  }
  0x49   : > { %306 = vperm.xlu1 %2650, %v3042_v29  }
  0x4a   : > { %600 = vperm.xlu0 %2653, %v3055_v32  }
  0x4d   : > { %2651 = vset.pattern.permute.xlu1 %v2838_v14 }
  0x4e   : > { %582 = vperm.xlu1 %2651, %v2985_v15   ;;  %2656 = vset.pattern.permute.xlu0 %v2839_v33 }
  0x4f   : > { %872 = vperm.xlu0 %2656, %v2960_v7  }
  0x52   : > { %585 = vperm.xlu1 %2651, %v3045_v30  }
  0x53   : > { %884 = vperm.xlu0 %2656, %v2974_v11  }
  0x56   : > { %2652 = vset.pattern.permute.xlu1 %v2837_v1  ;;  %v2693_v1 = vld [vmem:[%s3594_s1 + $0x38] sm:$0xff]  }
  0x57   : > { %309 = vperm.xlu1 %2652, %v3050_v31   ;;  %896 = vperm.xlu0 %2656, %v2985_v15  }
  0x5b   : > { %315 = vperm.xlu1 %2652, %v3071_v35   ;;  %908 = vperm.xlu0 %2656, %v2992_v17  }
  0x5f   : > { %318 = vperm.xlu1 %2652, %v3055_v32   ;;  %2663 = vset.pattern.permute.xlu0 %v2840_v36 }
  0x60   : > { %1183 = vperm.xlu0 %2663, %v2952_v5  }
  0x63   : > { %2654 = vset.pattern.permute.xlu1 %v2838_v14 }
  0x64   : > { %594 = vperm.xlu1 %2654, %v2992_v17   ;;  %1192 = vperm.xlu0 %2663, %v2957_v6  }
  0x68   : > { %597 = vperm.xlu1 %2654, %v3071_v35   ;;  %1195 = vperm.xlu0 %2663, %v3000_v19  }
  0x6c   : > { %2655 = vset.pattern.permute.xlu1 %v2839_v33  ;;  %1204 = vperm.xlu0 %2663, %v3023_v25  }
  0x6d   : > { %869 = vperm.xlu1 %2655, %v2952_v5   ;;  %v2692_v5 = vld [vmem:[%s3594_s1 + $0x20] sm:$0xff]  }
  0x70   : > { %1207 = vperm.xlu0 %2663, %v262_v28  }
  0x71   : > { %875 = vperm.xlu1 %2655, %v2949_v4  }
  0x74   : > { %1216 = vperm.xlu0 %2663, %v3042_v29  }
  0x75   : > { %878 = vperm.xlu1 %2655, %v2957_v6  }
  0x78   : > { %1219 = vperm.xlu0 %2663, %v3050_v31  }
  0x79   : > { %2657 = vset.pattern.permute.xlu1 %v2840_v36 }
  0x7a   : > { %1186 = vperm.xlu1 %2657, %v2960_v7   ;;  %v2694_v7 = vld [vmem:[%s3594_s1 + $0x28] sm:$0xff]  }
  0x7c   : > { %1228 = vperm.xlu0 %2663, %v3055_v32  }
  0x7e   : > { %1189 = vperm.xlu1 %2657, %v2949_v4  }
  0x82   : > { %2658 = vset.pattern.permute.xlu1 %v2839_v33 }
  0x83   : > { %881 = vperm.xlu1 %2658, %v3000_v19  }
  0x87   : > { %887 = vperm.xlu1 %2658, %v3014_v23  }
  0x8b   : > { %890 = vperm.xlu1 %2658, %v3023_v25  }
  0x8f   : > { %2659 = vset.pattern.permute.xlu1 %v2840_v36 }
  0x90   : > { %1198 = vperm.xlu1 %2659, %v2974_v11  }
  0x94   : > { %1201 = vperm.xlu1 %2659, %v3014_v23  }
  0x98   : > { %v280_v39 = vpop.permute.xlu1 %279  ;;  %2660 = vset.pattern.permute.xlu1 %v2839_v33  ;;  %v274_v40 = vpop.permute.xlu0 %273 }
  0x99   : > { %893 = vperm.xlu1 %2660, %v262_v28   ;;  %vm320_vm0 = vcmp.eq.s32.totalorder %v3108_v41, %v274_v40  ;;  %vm322_vm1 = vcmp.eq.s32.totalorder %v3108_v41, %v280_v39 }
  0x9c   : > { %v283_v42 = vpop.permute.xlu1 %282  ;;  %v277_v43 = vpop.permute.xlu0 %276 }
  0x9d   : > { %vm323_vm2 = vcmp.eq.s32.totalorder %v3108_v41, %v283_v42  ;;  %899 = vperm.xlu1 %2660, %v3045_v30   ;;  %vm321_vm3 = vcmp.eq.s32.totalorder %v3108_v41, %v277_v43 }
  0x9e   : > { %vm2158_vm4 = vmpackc.low %vm323_vm2, %vm322_vm1 }
  0x9f   : > { %vm2156_vm5 = vmpackc.low %vm321_vm3, %vm320_vm0 }
  0xa0   : > { %2428 = vmatprep.mubr.msk.bf16.mxu0 %vm2156_vm5, %v2841_v45  ;;  %v289_v46 = vpop.permute.xlu0 %288 }
  0xa1   : > { %2429 = vmatmul.mubr.msk.bf16.vlgmr.msra.gmra.mrb[0].mxu0 %vm2158_vm4, %v2841_v45  ;;  %v559_v47 = vpop.permute.xlu1 %558  ;;  %902 = vperm.xlu1 %2660, %v3042_v29   ;;  %vm325_vm6 = vcmp.eq.s32.totalorder %v3108_v41, %v289_v46 }
  0xa2   : > { %2477 = vmatpush3.bf16.msra.mxu0 %v2681_v34  ;;  %vm603_vm10 = vcmp.eq.s32.totalorder %v3108_v41, %v559_v47 }
  0xa3   : > { %2478 = vmatprep.subr.bf16.mxu0 %v2682_v44 }
  0xa4   : > { %v3124_v49 = vpop.permute.xlu0 %300 }
  0xa5   : > { %v562_v50 = vpop.permute.xlu1 %561  ;;  %2661 = vset.pattern.permute.xlu1 %v2840_v36 }
  0xa6   : > { %1210 = vperm.xlu1 %2661, %v2985_v15   ;;  %2479 = vmatpush3.bf16.msra.mxu0 %v2682_v44  ;;  %vm604_vm12 = vcmp.eq.s32.totalorder %v3108_v41, %v562_v50 }
  0xa7   : > { %2480 = vmatprep.subr.bf16.mxu0 %v2683_v48 }
  0xa8   : > { %v3131_v52 = vpop.permute.xlu0 %312 }
  0xaa   : > { %v286_v53 = vpop.permute.xlu1 %285  ;;  %1213 = vperm.xlu1 %2661, %v3045_v30   ;;  %2481 = vmatpush3.bf16.msra.mxu0 %v2683_v48 }
  0xab   : > { %vm324_vm7 = vcmp.eq.s32.totalorder %v3108_v41, %v286_v53  ;;  %2482 = vmatprep.subr.bf16.mxu0 %v2685_v51 }
  0xac   : > { %vm2160_vm8 = vmpackc.low %vm325_vm6, %vm324_vm7 }
  0xad   : > { %2432 = vmatprep.mubr.msk.bf16.mxu0 %vm2160_vm8, %v2841_v45  ;;  %v556_v55 = vpop.permute.xlu0 %555  ;;  %vm329_vm8 = vcmp.eq.s32.totalorder %v3108_v41, %v3124_v49 }
  0xae   : > { %vm602_vm9 = vcmp.eq.s32.totalorder %v3108_v41, %v556_v55  ;;  %v292_v56 = vpop.permute.xlu1 %291  ;;  %2662 = vset.pattern.permute.xlu1 %v2839_v33  ;;  %2483 = vmatpush3.bf16.msra.mxu0 %v2685_v51 }
  0xaf   : > { %905 = vperm.xlu1 %2662, %v3050_v31   ;;  %vm2196_vm11 = vmpackc.low %vm603_vm10, %vm602_vm9  ;;  %2484 = vmatprep.subr.bf16.mxu0 %v2687_v54  ;;  %vm326_vm14 = vcmp.eq.s32.totalorder %v3108_v41, %v292_v56 }
  0xb0   : > { %2460 = vmatprep.mubr.msk.bf16.mxu1 %vm2196_vm11, %v2841_v45 }
  0xb1   : > { %v565_v58 = vpop.permute.xlu0 %564 }
  0xb2   : > { %vm605_vm13 = vcmp.eq.s32.totalorder %v3108_v41, %v565_v58  ;;  %v295_v59 = vpop.permute.xlu1 %294  ;;  %2485 = vmatpush3.bf16.msra.mxu0 %v2687_v54 }
  0xb3   : > { %vm2198_vm15 = vmpackc.low %vm605_vm13, %vm604_vm12  ;;  %vm327_vm0 = vcmp.eq.s32.totalorder %v3108_v41, %v295_v59  ;;  %911 = vperm.xlu1 %2662, %v3071_v35   ;;  %2486 = vmatprep.subr.bf16.mxu0 %v2689_v57 }
  0xb4   : > { %vm2162_vm1 = vmpackc.low %vm327_vm0, %vm326_vm14  ;;  %2461 = vmatmul.mubr.msk.bf16.vlgmr.msra.gmra.mrb[0].mxu1 %vm2198_vm15, %v2841_v45 }
  0xb5   : > { %2433 = vmatmul.mubr.msk.bf16.gmra.mrb[4].mxu0 %vm2162_vm1, %v2841_v45  ;;  %v568_v62 = vpop.permute.xlu0 %567  ;;  %2509 = vmatpush3.bf16.msra.mxu1 %v3080_v37 }
  0xb6   : > { %vm606_vm2 = vcmp.eq.s32.totalorder %v3108_v41, %v568_v62  ;;  %2510 = vmatprep.subr.bf16.mxu1 %v2686_v60  ;;  %2487 = vmatpush3.bf16.msra.mxu0 %v2689_v57 }
  0xb7   : > { %v571_v0 = vpop.permute.xlu1 %570  ;;  %914 = vperm.xlu1 %2662, %v3055_v32   ;;  %2488 = vmatprep.subr.bf16.mxu0 %v2691_v61 }
  0xb8   : > { %vm607_vm3 = vcmp.eq.s32.totalorder %v3108_v41, %v571_v0 }
  0xb9   : > { %vm2200_vm4 = vmpackc.low %vm607_vm3, %vm606_vm2  ;;  %v577_v2 = vpop.permute.xlu0 %576  ;;  %2511 = vmatpush3.bf16.msra.mxu1 %v2686_v60 }
  0xba   : > { %2464 = vmatprep.mubr.msk.bf16.mxu1 %vm2200_vm4, %v2841_v45  ;;  %vm609_vm5 = vcmp.eq.s32.totalorder %v3108_v41, %v577_v2  ;;  %2512 = vmatprep.subr.bf16.mxu1 %v2688_v63  ;;  %vm333_vm4 = vcmp.eq.s32.totalorder %v3108_v41, %v3131_v52 }
  0xbb   : > { %v574_v4 = vpop.permute.xlu1 %573  ;;  %2664 = vset.pattern.permute.xlu1 %v2840_v36  ;;  %2489 = vmatpush3.bf16.msra.mxu0 %v2691_v61 }
  0xbc   : > { %vm608_vm6 = vcmp.eq.s32.totalorder %v3108_v41, %v574_v4  ;;  %1222 = vperm.xlu1 %2664, %v2992_v17   ;;  %2490 = vmatprep.subr.bf16.mxu0 %v2693_v1 }
  0xbd   : > { %vm2202_vm7 = vmpackc.low %vm609_vm5, %vm608_vm6  ;;  %2513 = vmatpush3.bf16.msra.mxu1 %v2688_v63  ;;  %v580_v9 = vpop.permute.xlu0 %579 }
  0xbe   : > { %2465 = vmatmul.mubr.msk.bf16.gmra.mrb[4].mxu1 %vm2202_vm7, %v2841_v45  ;;  %2514 = vmatprep.subr.bf16.mxu1 %v2690_v3  ;;  %vm610_vm14 = vcmp.eq.s32.totalorder %v3108_v41, %v580_v9 }
  0xbf   : > { %2491 = vmatpush3.bf16.msra.mxu0 %v2693_v1 }
  0xc0   : > { %v298_v6 = vpop.permute.xlu1 %297  ;;  %1225 = vperm.xlu1 %2664, %v3071_v35  }
  0xc1   : > { %vm328_vm9 = vcmp.eq.s32.totalorder %v3108_v41, %v298_v6  ;;  %2515 = vmatpush3.bf16.msra.mxu1 %v2690_v3  ;;  %v589_v13 = vpop.permute.xlu0 %588 }
  0xc2   : > { %vm2164_vm10 = vmpackc.low %vm329_vm8, %vm328_vm9  ;;  %2516 = vmatprep.subr.bf16.mxu1 %v2692_v5  ;;  %vm613_vm1 = vcmp.eq.s32.totalorder %v3108_v41, %v589_v13 }
  0xc3   : > { %2436 = vmatprep.mubr.msk.bf16.mxu0 %vm2164_vm10, %v2841_v45 }
  0xc4   : > { %v304_v8 = vpop.permute.xlu1 %303 }
  0xc5   : > { %2517 = vmatpush3.bf16.msra.mxu1 %v2692_v5  ;;  %vm330_vm11 = vcmp.eq.s32.totalorder %v3108_v41, %v304_v8  ;;  %v592_v15 = vpop.permute.xlu0 %591 }
  0xc6   : > { %2518 = vmatprep.subr.bf16.mxu1 %v2694_v7  ;;  %vm614_vm10 = vcmp.eq.s32.totalorder %v3108_v41, %v592_v15 }
  0xc8   : > { %v307_v11 = vpop.permute.xlu1 %306 }
  0xc9   : > { %vm331_vm12 = vcmp.eq.s32.totalorder %v3108_v41, %v307_v11  ;;  %2519 = vmatpush3.bf16.msra.mxu1 %v2694_v7  ;;  %v601_v17 = vpop.permute.xlu0 %600 }
  0xca   : > { %vm2166_vm13 = vmpackc.low %vm331_vm12, %vm330_vm11  ;;  %2520 = vmatprep.subr.bf16.mxu1 %v2695_v10 }
  0xcb   : > { %2437 = vmatmul.mubr.msk.bf16.gmra.mrb[8].mxu0 %vm2166_vm13, %v2841_v45  ;;  %vm617_vm13 = vcmp.eq.s32.totalorder %v3108_v41, %v601_v17 }
  0xcd   : > { %v583_v14 = vpop.permute.xlu1 %582  ;;  %2521 = vmatpush3.bf16.msra.mxu1 %v2695_v10 }
  0xce   : > { %vm611_vm15 = vcmp.eq.s32.totalorder %v3108_v41, %v583_v14  ;;  %2522 = vmatprep.subr.bf16.mxu1 %v2696_v12  ;;  %v873_v20 = vpop.permute.xlu0 %872 }
  0xcf   : > { %vm2204_vm0 = vmpackc.low %vm611_vm15, %vm610_vm14 }
  0xd0   : > { %2468 = vmatprep.mubr.msk.bf16.mxu1 %vm2204_vm0, %v2841_v45  ;;  %vm917_vm0 = vcmp.eq.s32.totalorder %v3108_v41, %v873_v20 }
  0xd1   : > { %v586_v16 = vpop.permute.xlu1 %585  ;;  %2523 = vmatpush3.bf16.msra.mxu1 %v2696_v12 }
  0xd2   : > { %vm612_vm2 = vcmp.eq.s32.totalorder %v3108_v41, %v586_v16  ;;  %v885_v22 = vpop.permute.xlu0 %884 }
  0xd3   : > { %vm2206_vm3 = vmpackc.low %vm613_vm1, %vm612_vm2 }
  0xd4   : > { %2469 = vmatmul.mubr.msk.bf16.gmra.mrb[8].mxu1 %vm2206_vm3, %v2841_v45 }
  0xd6   : > { %v310_v18 = vpop.permute.xlu1 %309  ;;  %v897_v25 = vpop.permute.xlu0 %896 }
  0xd7   : > { %vm332_vm5 = vcmp.eq.s32.totalorder %v3108_v41, %v310_v18 }
  0xd8   : > { %vm2168_vm6 = vmpackc.low %vm333_vm4, %vm332_vm5 }
  0xd9   : > { %2440 = vmatprep.mubr.msk.bf16.mxu0 %vm2168_vm6, %v2841_v45 }
  0xda   : > { %v316_v19 = vpop.permute.xlu1 %315  ;;  %v3221_v27 = vpop.permute.xlu0 %908 }
  0xdb   : > { %vm334_vm7 = vcmp.eq.s32.totalorder %v3108_v41, %v316_v19 }
  0xde   : > { %v319_v21 = vpop.permute.xlu1 %318 }
  0xdf   : > { %vm335_vm8 = vcmp.eq.s32.totalorder %v3108_v41, %v319_v21  ;;  %v1184_v29 = vpop.permute.xlu0 %1183 }
  0xe0   : > { %vm2170_vm9 = vmpackc.low %vm335_vm8, %vm334_vm7  ;;  %vm1230_vm6 = vcmp.eq.s32.totalorder %v3108_v41, %v1184_v29 }
  0xe1   : > { %2441 = vmatmul.mubr.msk.bf16.gmra.mrb[12].mxu0 %vm2170_vm9, %v2841_v45 }
  0xe3   : > { %v595_v23 = vpop.permute.xlu1 %594  ;;  %v1193_v32 = vpop.permute.xlu0 %1192 }
  0xe4   : > { %vm615_vm11 = vcmp.eq.s32.totalorder %v3108_v41, %v595_v23  ;;  %vm1233_vm9 = vcmp.eq.s32.totalorder %v3108_v41, %v1193_v32 }
  0xe5   : > { %vm2208_vm12 = vmpackc.low %vm615_vm11, %vm614_vm10 }
  0xe6   : > { %2472 = vmatprep.mubr.msk.bf16.mxu1 %vm2208_vm12, %v2841_v45  ;;  %vm921_vm12 = vcmp.eq.s32.totalorder %v3108_v41, %v885_v22 }
  0xe7   : > { %v598_v24 = vpop.permute.xlu1 %597  ;;  %v1196_v37 = vpop.permute.xlu0 %1195 }
  0xe8   : > { %vm616_vm14 = vcmp.eq.s32.totalorder %v3108_v41, %v598_v24 }
  0xe9   : > { %vm2210_vm15 = vmpackc.low %vm617_vm13, %vm616_vm14 }
  0xea   : > { %2473 = vmatmul.mubr.msk.bf16.gmra.mrb[12].mxu1 %vm2210_vm15, %v2841_v45 }
  0xeb   : > { %v1205_v39 = vpop.permute.xlu0 %1204 }
  0xec   : > { %v870_v26 = vpop.permute.xlu1 %869 }
  0xed   : > { %vm916_vm1 = vcmp.eq.s32.totalorder %v3108_v41, %v870_v26 }
  0xee   : > { %vm2236_vm2 = vmpackc.low %vm917_vm0, %vm916_vm1 }
  0xef   : > { %2492 = vmatprep.mubr.msk.bf16.mxu0 %vm2236_vm2, %v2841_v45  ;;  %vm1234_vm2 = vcmp.eq.s32.totalorder %v3108_v41, %v1196_v37  ;;  %v1208_v46 = vpop.permute.xlu0 %1207 }
  0xf0   : > { %v876_v28 = vpop.permute.xlu1 %875 }
  0xf1   : > { %vm918_vm3 = vcmp.eq.s32.totalorder %v3108_v41, %v876_v28 }
  0xf3   : > { %v1217_v48 = vpop.permute.xlu0 %1216 }
  0xf4   : > { %v879_v30 = vpop.permute.xlu1 %878 }
  0xf5   : > { %vm919_vm4 = vcmp.eq.s32.totalorder %v3108_v41, %v879_v30 }
  0xf6   : > { %vm2238_vm5 = vmpackc.low %vm919_vm4, %vm918_vm3 }
  0xf7   : > { %2493 = vmatmul.mubr.msk.bf16.vlgmr.msra.gmra.mrb[16].mxu0 %vm2238_vm5, %v2841_v45  ;;  %vm1237_vm5 = vcmp.eq.s32.totalorder %v3108_v41, %v1205_v39  ;;  %v1220_v53 = vpop.permute.xlu0 %1219  ;;  %v2697_v39 = vld [vmem:[%s3595_s2] sm:$0xff]  }
  0xf8   : > { %2540 = vmatprep.subr.bf16.mxu0 %v2697_v39 }
  0xf9   : > { %v1187_v31 = vpop.permute.xlu1 %1186  ;;  %2541 = vmatpush3.bf16.msra.mxu0 %v2697_v39 }
  0xfa   : > { %vm1231_vm7 = vcmp.eq.s32.totalorder %v3108_v41, %v1187_v31 }
  0xfb   : > { %vm2276_vm8 = vmpackc.low %vm1231_vm7, %vm1230_vm6  ;;  %v1229_v55 = vpop.permute.xlu0 %1228 }
  0xfc   : > { %2524 = vmatprep.mubr.msk.bf16.mxu1 %vm2276_vm8, %v2841_v45  ;;  %vm925_vm8 = vcmp.eq.s32.totalorder %v3108_v41, %v897_v25 }
  0xfd   : > { %v1190_v33 = vpop.permute.xlu1 %1189 }
  0xfe   : > { %vm1232_vm10 = vcmp.eq.s32.totalorder %v3108_v41, %v1190_v33 }
  0xff   : > { %vm2278_vm11 = vmpackc.low %vm1233_vm9, %vm1232_vm10 }
 0x100   : > { %2525 = vmatmul.mubr.msk.bf16.vlgmr.msra.gmra.mrb[16].mxu1 %vm2278_vm11, %v2841_v45 }
 0x102   : > { %v882_v34 = vpop.permute.xlu1 %881 }
 0x103   : > { %vm920_vm13 = vcmp.eq.s32.totalorder %v3108_v41, %v882_v34 }
 0x104   : > { %vm2240_vm14 = vmpackc.low %vm921_vm12, %vm920_vm13 }
 0x105   : > { %2496 = vmatprep.mubr.msk.bf16.mxu0 %vm2240_vm14, %v2841_v45  ;;  %vm1238_vm14 = vcmp.eq.s32.totalorder %v3108_v41, %v1208_v46  ;;  %v2699_v46 = vld [vmem:[%s3595_s2 + $0x10] sm:$0xff]  }
 0x106   : > { %v888_v35 = vpop.permute.xlu1 %887 }
 0x107   : > { %vm922_vm15 = vcmp.eq.s32.totalorder %v3108_v41, %v888_v35 }
 0x10a   : > { %v891_v36 = vpop.permute.xlu1 %890 }
 0x10b   : > { %vm923_vm0 = vcmp.eq.s32.totalorder %v3108_v41, %v891_v36 }
 0x10c   : > { %vm2242_vm1 = vmpackc.low %vm923_vm0, %vm922_vm15 }
 0x10d   : > { %2497 = vmatmul.mubr.msk.bf16.gmra.mrb[20].mxu0 %vm2242_vm1, %v2841_v45  ;;  %vm1241_vm1 = vcmp.eq.s32.totalorder %v3108_v41, %v1217_v48 }
 0x10f   : > { %v1199_v38 = vpop.permute.xlu1 %1198 }
 0x110   : > { %vm1235_vm3 = vcmp.eq.s32.totalorder %v3108_v41, %v1199_v38 }
 0x111   : > { %vm2280_vm4 = vmpackc.low %vm1235_vm3, %vm1234_vm2 }
 0x112   : > { %2528 = vmatprep.mubr.msk.bf16.mxu1 %vm2280_vm4, %v2841_v45  ;;  %vm929_vm4 = vcmp.eq.s32.totalorder %v3108_v41, %v3221_v27 }
 0x113   : > { %v1202_v40 = vpop.permute.xlu1 %1201 }
 0x114   : > { %vm1236_vm6 = vcmp.eq.s32.totalorder %v3108_v41, %v1202_v40  ;;  %v2698_v40 = vld [vmem:[%s3595_s2 + $0x8] sm:$0xff]  }
 0x115   : > { %vm2282_vm7 = vmpackc.low %vm1237_vm5, %vm1236_vm6  ;;  %2542 = vmatprep.subr.bf16.mxu0 %v2698_v40 }
 0x116   : > { %2529 = vmatmul.mubr.msk.bf16.gmra.mrb[20].mxu1 %vm2282_vm7, %v2841_v45  ;;  %2543 = vmatpush3.bf16.msra.mxu0 %v2698_v40 }
 0x117   : > { %2544 = vmatprep.subr.bf16.mxu0 %v2699_v46 }
 0x118   : > { %v894_v42 = vpop.permute.xlu1 %893 }
 0x119   : > { %vm924_vm9 = vcmp.eq.s32.totalorder %v3108_v41, %v894_v42 }
 0x11a   : > { %vm2244_vm10 = vmpackc.low %vm925_vm8, %vm924_vm9  ;;  %2545 = vmatpush3.bf16.msra.mxu0 %v2699_v46 }
 0x11b   : > { %2500 = vmatprep.mubr.msk.bf16.mxu0 %vm2244_vm10, %v2841_v45  ;;  %vm1242_vm10 = vcmp.eq.s32.totalorder %v3108_v41, %v1220_v53 }
 0x11c   : > { %v900_v43 = vpop.permute.xlu1 %899 }
 0x11d   : > { %vm926_vm11 = vcmp.eq.s32.totalorder %v3108_v41, %v900_v43 }
 0x120   : > { %v903_v44 = vpop.permute.xlu1 %902 }
 0x121   : > { %vm927_vm12 = vcmp.eq.s32.totalorder %v3108_v41, %v903_v44 }
 0x122   : > { %vm2246_vm13 = vmpackc.low %vm927_vm12, %vm926_vm11 }
 0x123   : > { %2501 = vmatmul.mubr.msk.bf16.gmra.mrb[24].mxu0 %vm2246_vm13, %v2841_v45  ;;  %vm1245_vm13 = vcmp.eq.s32.totalorder %v3108_v41, %v1229_v55 }
 0x125   : > { %v1211_v47 = vpop.permute.xlu1 %1210 }
 0x126   : > { %vm1239_vm15 = vcmp.eq.s32.totalorder %v3108_v41, %v1211_v47  ;;  %v2700_v47 = vld [vmem:[%s3595_s2 + $0x18] sm:$0xff]  }
 0x127   : > { %vm2284_vm0 = vmpackc.low %vm1239_vm15, %vm1238_vm14  ;;  %2546 = vmatprep.subr.bf16.mxu0 %v2700_v47 }
 0x128   : > { %2532 = vmatprep.mubr.msk.bf16.mxu1 %vm2284_vm0, %v2841_v45  ;;  %vm545_vm0 = vcmask 130048   ;;  %2547 = vmatpush3.bf16.msra.mxu0 %v2700_v47 }
 0x129   : > { %v1214_v49 = vpop.permute.xlu1 %1213 }
 0x12a   : > { %vm1240_vm2 = vcmp.eq.s32.totalorder %v3108_v41, %v1214_v49 }
 0x12b   : > { %vm2286_vm3 = vmpackc.low %vm1241_vm1, %vm1240_vm2  ;;  %vm859_vm1 = vcmask 261248   ;;  %vm1173_vm2 = vcmask 392448  }
 0x12c   : > { %2533 = vmatmul.mubr.msk.bf16.gmra.mrb[24].mxu1 %vm2286_vm3, %v2841_v45  ;;  %vm1487_vm3 = vcmask 523648  }
 0x12e   : > { %v906_v50 = vpop.permute.xlu1 %905 }
 0x12f   : > { %vm928_vm5 = vcmp.eq.s32.totalorder %v3108_v41, %v906_v50 }
 0x130   : > { %vm2248_vm6 = vmpackc.low %vm929_vm4, %vm928_vm5  ;;  %vm1543_vm4 = vcmask 523264  }
 0x131   : > { %2504 = vmatprep.mubr.msk.bf16.mxu0 %vm2248_vm6, %v2841_v45 }
 0x132   : > { %v912_v51 = vpop.permute.xlu1 %911 }
 0x133   : > { %vm930_vm7 = vcmp.eq.s32.totalorder %v3108_v41, %v912_v51 }
 0x136   : > { %v915_v52 = vpop.permute.xlu1 %914 }
 0x137   : > { %vm931_vm8 = vcmp.eq.s32.totalorder %v3108_v41, %v915_v52 }
 0x138   : > { %vm2250_vm9 = vmpackc.low %vm931_vm8, %vm930_vm7 }
 0x139   : > { %2505 = vmatmul.mubr.msk.bf16.gmra.mrb[28].mxu0 %vm2250_vm9, %v2841_v45 }
 0x13b   : > { %v1223_v54 = vpop.permute.xlu1 %1222 }
 0x13c   : > { %vm1243_vm11 = vcmp.eq.s32.totalorder %v3108_v41, %v1223_v54 }
 0x13d   : > { %vm2288_vm12 = vmpackc.low %vm1243_vm11, %vm1242_vm10 }
 0x13e   : > { %2536 = vmatprep.mubr.msk.bf16.mxu1 %vm2288_vm12, %v2841_v45 }
 0x13f   : > { %v1226_v56 = vpop.permute.xlu1 %1225 }
 0x140   : > { %vm1244_vm14 = vcmp.eq.s32.totalorder %v3108_v41, %v1226_v56 }
 0x141   : > { %vm2290_vm15 = vmpackc.low %vm1245_vm13, %vm1244_vm14 }
 0x142   : > { %2537 = vmatmul.mubr.msk.bf16.gmra.mrb[28].mxu1 %vm2290_vm15, %v2841_v45 }
 0x174   : > { %v2430_v57 = vpop.f32.mrb[0].mxu0 }
 0x175   : > { %v474_v58 = vpop.f32.mrb[1].mxu0 }
 0x176   : > { %v2431_v59 = vpop.f32.mrb[2].mxu0 }
 0x177   : > { %v538_v60 = vpack.c.bf16 %v2431_v59, %v2430_v57  ;;  %v477_v61 = vpop.f32.mrb[3].mxu0 }
 0x178   : > { %v537_v62 = vpack.c.bf16 %v477_v61, %v474_v58 }
 0x179   : > { %547 = vst.msk [vmem:[#allocation2 + $0x8] sm:$0xff] %vm545_vm0, %v538_v60 }
 0x17a   : > { %546 = vst.msk [vmem:[#allocation2] sm:$0xff] %vm545_vm0, %v537_v62 }
 0x187   : > { %v2462_v63 = vpop.f32.mrb[0].mxu1 }
 0x188   : > { %v2434_v0 = vpop.f32.mrb[4].mxu0  ;;  %v756_v1 = vpop.f32.mrb[1].mxu1 }
 0x189   : > { %v490_v2 = vpop.f32.mrb[5].mxu0  ;;  %v2463_v3 = vpop.f32.mrb[2].mxu1 }
 0x18a   : > { %v820_v41 = vpack.c.bf16 %v2463_v3, %v2462_v63  ;;  %v2435_v4 = vpop.f32.mrb[6].mxu0  ;;  %v759_v5 = vpop.f32.mrb[3].mxu1 }
 0x18b   : > { %v540_v45 = vpack.c.bf16 %v2435_v4, %v2434_v0  ;;  %v819_v6 = vpack.c.bf16 %v759_v5, %v756_v1  ;;  %v493_v7 = vpop.f32.mrb[7].mxu0 }
 0x18c   : > { %v539_v8 = vpack.c.bf16 %v493_v7, %v490_v2  ;;  %837 = vrot.lane.b32.xlu0 %v820_v41, %s2842_s20 }
 0x18d   : > { %549 = vst.msk [vmem:[#allocation2 + $0x18] sm:$0xff] %vm545_vm0, %v540_v45  ;;  %835 = vrot.lane.b32.xlu1 %v819_v6, %s2842_s20 }
 0x18e   : > { %548 = vst.msk [vmem:[#allocation2 + $0x10] sm:$0xff] %vm545_vm0, %v539_v8 }
 0x191   : > { %v2466_v9 = vpop.f32.mrb[4].mxu1 }
 0x192   : > { %v772_v10 = vpop.f32.mrb[5].mxu1 }
 0x193   : > { %v2467_v11 = vpop.f32.mrb[6].mxu1 }
 0x194   : > { %v822_v12 = vpack.c.bf16 %v2467_v11, %v2466_v9  ;;  %v775_v13 = vpop.f32.mrb[7].mxu1 }
 0x195   : > { %v821_v14 = vpack.c.bf16 %v775_v13, %v772_v10 }
 0x196   : > { %841 = vrot.lane.b32.xlu0 %v822_v12, %s2842_s20 }
 0x197   : > { %839 = vrot.lane.b32.xlu1 %v821_v14, %s2842_s20 }
 0x19e   : > { %v2438_v15 = vpop.f32.mrb[8].mxu0 }
 0x19f   : > { %v506_v16 = vpop.f32.mrb[9].mxu0 }
 0x1a0   : > { %v2439_v17 = vpop.f32.mrb[10].mxu0 }
 0x1a1   : > { %v542_v18 = vpack.c.bf16 %v2439_v17, %v2438_v15  ;;  %v509_v19 = vpop.f32.mrb[11].mxu0 }
 0x1a2   : > { %v541_v20 = vpack.c.bf16 %v509_v19, %v506_v16 }
 0x1a3   : > { %551 = vst.msk [vmem:[#allocation2 + $0x28] sm:$0xff] %vm545_vm0, %v542_v18 }
 0x1a4   : > { %550 = vst.msk [vmem:[#allocation2 + $0x20] sm:$0xff] %vm545_vm0, %v541_v20 }
 0x1a7   : > { %v2470_v21 = vpop.f32.mrb[8].mxu1 }
 0x1a8   : > { %v788_v22 = vpop.f32.mrb[9].mxu1 }
 0x1a9   : > { %v2471_v23 = vpop.f32.mrb[10].mxu1 }
 0x1aa   : > { %v824_v24 = vpack.c.bf16 %v2471_v23, %v2470_v21  ;;  %v791_v25 = vpop.f32.mrb[11].mxu1 }
 0x1ab   : > { %v823_v26 = vpack.c.bf16 %v791_v25, %v788_v22 }
 0x1ac   : > { %845 = vrot.lane.b32.xlu0 %v824_v24, %s2842_s20 }
 0x1ad   : > { %843 = vrot.lane.b32.xlu1 %v823_v26, %s2842_s20 }
 0x1b4   : > { %v2442_v27 = vpop.f32.mrb[12].mxu0 }
 0x1b5   : > { %v522_v28 = vpop.f32.mrb[13].mxu0 }
 0x1b6   : > { %v2443_v29 = vpop.f32.mrb[14].mxu0 }
 0x1b7   : > { %v544_v30 = vpack.c.bf16 %v2443_v29, %v2442_v27  ;;  %v525_v31 = vpop.f32.mrb[15].mxu0  ;;  %v2702_v29 = vld [vmem:[%s3597_s4 + $0x8] sm:$0xff]  }
 0x1b8   : > { %v543_v32 = vpack.c.bf16 %v525_v31, %v522_v28  ;;  %v2701_v28 = vld [vmem:[%s3597_s4] sm:$0xff]  }
 0x1b9   : > { %553 = vst.msk [vmem:[#allocation2 + $0x38] sm:$0xff] %vm545_vm0, %v544_v30  ;;  %2564 = vmatprep.subr.bf16.mxu1 %v2701_v28 }
 0x1ba   : > { %552 = vst.msk [vmem:[#allocation2 + $0x30] sm:$0xff] %vm545_vm0, %v543_v32  ;;  %2565 = vmatpush3.bf16.msra.mxu1 %v2701_v28 }
 0x1bb   : > { %2566 = vmatprep.subr.bf16.mxu1 %v2702_v29 }
 0x1bd   : > { %v2474_v33 = vpop.f32.mrb[12].mxu1 }
 0x1be   : > { %v804_v34 = vpop.f32.mrb[13].mxu1  ;;  %2567 = vmatpush3.bf16.msra.mxu1 %v2702_v29 }
 0x1bf   : > { %v2475_v35 = vpop.f32.mrb[14].mxu1 }
 0x1c0   : > { %v826_v36 = vpack.c.bf16 %v2475_v35, %v2474_v33  ;;  %v807_v37 = vpop.f32.mrb[15].mxu1  ;;  %v2703_v33 = vld [vmem:[%s3597_s4 + $0x10] sm:$0xff]  }
 0x1c1   : > { %v825_v38 = vpack.c.bf16 %v807_v37, %v804_v34  ;;  %2568 = vmatprep.subr.bf16.mxu1 %v2703_v33  ;;  %v2705_v37 = vld [vmem:[%s3597_s4 + $0x20] sm:$0xff]  }
 0x1c2   : > { %849 = vrot.lane.b32.xlu0 %v826_v36, %s2842_s20  ;;  %v2704_v36 = vld [vmem:[%s3597_s4 + $0x18] sm:$0xff]   ;;  %2569 = vmatpush3.bf16.msra.mxu1 %v2703_v33 }
 0x1c3   : > { %847 = vrot.lane.b32.xlu1 %v825_v38, %s2842_s20  ;;  %2570 = vmatprep.subr.bf16.mxu1 %v2704_v36  ;;  %v2706_v38 = vld [vmem:[%s3597_s4 + $0x28] sm:$0xff]  }
 0x1c6   : > { %2571 = vmatpush3.bf16.msra.mxu1 %v2704_v36 }
 0x1c7   : > { %2572 = vmatprep.subr.bf16.mxu1 %v2705_v37 }
 0x1ca   : > { %v2494_v42 = vpop.f32.mrb[16].mxu0  ;;  %2573 = vmatpush3.bf16.msra.mxu1 %v2705_v37 }
 0x1cb   : > { %v1070_v43 = vpop.f32.mrb[17].mxu0  ;;  %2574 = vmatprep.subr.bf16.mxu1 %v2706_v38 }
 0x1cc   : > { %v2495_v44 = vpop.f32.mrb[18].mxu0 }
 0x1cd   : > { %v1134_v48 = vpack.c.bf16 %v2495_v44, %v2494_v42  ;;  %v1073_v49 = vpop.f32.mrb[19].mxu0 }
 0x1ce   : > { %v1133_v50 = vpack.c.bf16 %v1073_v49, %v1070_v43  ;;  %2575 = vmatpush3.bf16.msra.mxu1 %v2706_v38 }
 0x1cf   : > { %1151 = vrot.lane.b32.xlu0 %v1134_v48, %s2843_s13 }
 0x1d0   : > { %1149 = vrot.lane.b32.xlu1 %v1133_v50, %s2843_s13 }
 0x1d3   : > { %v2526_v51 = vpop.f32.mrb[16].mxu1 }
 0x1d4   : > { %v1384_v52 = vpop.f32.mrb[17].mxu1 }
 0x1d5   : > { %v2527_v53 = vpop.f32.mrb[18].mxu1 }
 0x1d6   : > { %v1448_v54 = vpack.c.bf16 %v2527_v53, %v2526_v51  ;;  %v1387_v55 = vpop.f32.mrb[19].mxu1 }
 0x1d7   : > { %v1447_v56 = vpack.c.bf16 %v1387_v55, %v1384_v52 }
 0x1d8   : > { %1465 = vrot.lane.b32.xlu0 %v1448_v54, %s2844_s14 }
 0x1d9   : > { %1463 = vrot.lane.b32.xlu1 %v1447_v56, %s2844_s14 }
 0x1e0   : > { %v2498_v57 = vpop.f32.mrb[20].mxu0 }
 0x1e1   : > { %v1086_v58 = vpop.f32.mrb[21].mxu0 }
 0x1e2   : > { %v2499_v59 = vpop.f32.mrb[22].mxu0 }
 0x1e3   : > { %v1136_v60 = vpack.c.bf16 %v2499_v59, %v2498_v57  ;;  %v1089_v61 = vpop.f32.mrb[23].mxu0 }
 0x1e4   : > { %v1135_v62 = vpack.c.bf16 %v1089_v61, %v1086_v58 }
 0x1e5   : > { %1155 = vrot.lane.b32.xlu0 %v1136_v60, %s2843_s13 }
 0x1e6   : > { %1153 = vrot.lane.b32.xlu1 %v1135_v62, %s2843_s13 }
 0x1e9   : > { %v2530_v63 = vpop.f32.mrb[20].mxu1 }
 0x1ea   : > { %v1400_v0 = vpop.f32.mrb[21].mxu1 }
 0x1eb   : > { %v2531_v1 = vpop.f32.mrb[22].mxu1 }
 0x1ec   : > { %v1450_v2 = vpack.c.bf16 %v2531_v1, %v2530_v63  ;;  %v1403_v3 = vpop.f32.mrb[23].mxu1 }
 0x1ed   : > { %v1449_v41 = vpack.c.bf16 %v1403_v3, %v1400_v0  ;;  %v2707_v3 = vld [vmem:[%s3597_s4 + $0x30] sm:$0xff]  }
 0x1ee   : > { %1469 = vrot.lane.b32.xlu0 %v1450_v2, %s2844_s14  ;;  %2576 = vmatprep.subr.bf16.mxu1 %v2707_v3 }
 0x1ef   : > { %1467 = vrot.lane.b32.xlu1 %v1449_v41, %s2844_s14  ;;  %2577 = vmatpush3.bf16.msra.mxu1 %v2707_v3  ;;  %v2708_v41 = vld [vmem:[%s3597_s4 + $0x38] sm:$0xff]  }
 0x1f0   : > { %2578 = vmatprep.subr.bf16.mxu1 %v2708_v41 }
 0x1f3   : > { %2579 = vmatpush3.bf16.msra.mxu1 %v2708_v41 }
 0x1f6   : > { %v2502_v4 = vpop.f32.mrb[24].mxu0 }
 0x1f7   : > { %v1102_v5 = vpop.f32.mrb[25].mxu0 }
 0x1f8   : > { %v2503_v45 = vpop.f32.mrb[26].mxu0 }
 0x1f9   : > { %v1138_v6 = vpack.c.bf16 %v2503_v45, %v2502_v4  ;;  %v1105_v7 = vpop.f32.mrb[27].mxu0  ;;  %v2292_v4 = vld [vmem:[%s3596_s3] ss:$0 sm:$0xff] }
 0x1fa   : > { %v1137_v8 = vpack.c.bf16 %v1105_v7, %v1102_v5 }
 0x1fb   : > { %1159 = vrot.lane.b32.xlu0 %v1138_v6, %s2843_s13 }
 0x1fc   : > { %1157 = vrot.lane.b32.xlu1 %v1137_v8, %s2843_s13 }
 0x1fe   : > { %v838_v9 = vpop.permute.xlu0 %837 }
 0x1ff   : > { %861 = vst.msk [vmem:[#allocation2 + $0x8] sm:$0xff] %vm859_vm1, %v838_v9  ;;  %v836_v10 = vpop.permute.xlu1 %835  ;;  %v2534_v11 = vpop.f32.mrb[24].mxu1 }
 0x200   : > { %860 = vst.msk [vmem:[#allocation2] sm:$0xff] %vm859_vm1, %v836_v10  ;;  %v1416_v12 = vpop.f32.mrb[25].mxu1 }
 0x201   : > { %v2535_v13 = vpop.f32.mrb[26].mxu1 }
 0x202   : > { %v1452_v14 = vpack.c.bf16 %v2535_v13, %v2534_v11  ;;  %v1419_v15 = vpop.f32.mrb[27].mxu1 }
 0x203   : > { %v1451_v16 = vpack.c.bf16 %v1419_v15, %v1416_v12 }
 0x204   : > { %1473 = vrot.lane.b32.xlu0 %v1452_v14, %s2844_s14 }
 0x205   : > { %1471 = vrot.lane.b32.xlu1 %v1451_v16, %s2844_s14 }
 0x208   : > { %v842_v17 = vpop.permute.xlu0 %841 }
 0x209   : > { %863 = vst.msk [vmem:[#allocation2 + $0x18] sm:$0xff] %vm859_vm1, %v842_v17  ;;  %v840_v18 = vpop.permute.xlu1 %839 }
 0x20a   : > { %862 = vst.msk [vmem:[#allocation2 + $0x10] sm:$0xff] %vm859_vm1, %v840_v18 }
 0x20c   : > { %v2506_v19 = vpop.f32.mrb[28].mxu0 }
 0x20d   : > { %v1118_v20 = vpop.f32.mrb[29].mxu0 }
 0x20e   : > { %v2507_v21 = vpop.f32.mrb[30].mxu0 }
 0x20f   : > { %v1140_v22 = vpack.c.bf16 %v2507_v21, %v2506_v19  ;;  %v1121_v23 = vpop.f32.mrb[31].mxu0 }
 0x210   : > { %v1139_v24 = vpack.c.bf16 %v1121_v23, %v1118_v20 }
 0x211   : > { %1163 = vrot.lane.b32.xlu0 %v1140_v22, %s2843_s13 }
 0x212   : > { %1161 = vrot.lane.b32.xlu1 %v1139_v24, %s2843_s13  ;;  %s2773_s13 = scalar_lea.vmem %s3545_s9, 2048 }
 0x213   : > { %p2774_p11 = scmp.ne.s32.totalorder %s3545_s9, %s2773_s13 }
 0x215   : > { %v2538_v25 = vpop.f32.mrb[28].mxu1  ;;  %p2775_p12 = pnand %p2774_p11, %p2921_p5 }
 0x216   : > { %v1432_v26 = vpop.f32.mrb[29].mxu1 }
 0x217   : > { %v2539_v27 = vpop.f32.mrb[30].mxu1  ;;  %p2776_p13 = pneg %p2775_p12 }
 0x218   : > { %v1454_v30 = vpack.c.bf16 %v2539_v27, %v2538_v25  ;;  %v1435_v31 = vpop.f32.mrb[31].mxu1 }
 0x219   : > { %v1453_v32 = vpack.c.bf16 %v1435_v31, %v1432_v26 }
 0x21a   : > { %1477 = vrot.lane.b32.xlu0 %v1454_v30, %s2844_s14 }
 0x21b   : > { %1475 = vrot.lane.b32.xlu1 %v1453_v32, %s2844_s14  ;;  %s2845_s14 = smov [#allocation3]  }
 0x21c   : > { %s2777_s15 = sshll.u32 %s2845_s14, 4  ;;  %s2778_s15 = int_to_ptr.vmem [resolvable:$false] %s2777_s15 }
 0x21d   : > { %s2779_s16 = scalar_lea.vmem %s2778_s15, 4096  ;;  %p2780_p0 = scmp.lt.s32.totalorder %s3545_s9, %s2778_s15 }
 0x21e   : > { %v846_v34 = vpop.permute.xlu0 %845  ;;  %p2781_p1 = scmp.lt.s32.totalorder %s2779_s16, %s2773_s13 }
 0x21f   : > { %865 = vst.msk [vmem:[#allocation2 + $0x28] sm:$0xff] %vm859_vm1, %v846_v34  ;;  %v844_v35 = vpop.permute.xlu1 %843 }
 0x220   : > { %864 = vst.msk [vmem:[#allocation2 + $0x20] sm:$0xff] %vm859_vm1, %v844_v35  ;;  %p2782_p2 = por %p2781_p1, %p2780_p0 }
 0x222   : > { %p2783_p3 = pnand %p2782_p2, %p2776_p13 }
 0x234   : > { %v850_v39 = vpop.permute.xlu0 %849 }
 0x235   : > { %867 = vst.msk [vmem:[#allocation2 + $0x38] sm:$0xff] %vm859_vm1, %v850_v39  ;;  %v848_v40 = vpop.permute.xlu1 %847 }
 0x236   : > { %866 = vst.msk [vmem:[#allocation2 + $0x30] sm:$0xff] %vm859_vm1, %v848_v40 }
 0x241   : > { %v1152_v42 = vpop.permute.xlu0 %1151 }
 0x242   : > { %1175 = vst.msk [vmem:[#allocation2 + $0x8] sm:$0xff] %vm1173_vm2, %v1152_v42  ;;  %v1150_v43 = vpop.permute.xlu1 %1149 }
 0x243   : > { %1174 = vst.msk [vmem:[#allocation2] sm:$0xff] %vm1173_vm2, %v1150_v43 }
 0x24a   : > { %v1466_v44 = vpop.permute.xlu0 %1465 }
 0x24b   : > { %1489 = vst.msk [vmem:[#allocation2 + $0x8] sm:$0xff] %vm1487_vm3, %v1466_v44  ;;  %v1464_v46 = vpop.permute.xlu1 %1463 }
 0x24c   : > { %1488 = vst.msk [vmem:[#allocation2] sm:$0xff] %vm1487_vm3, %v1464_v46 }
 0x252   : > { %v1497_v48 = vld [vmem:[#allocation2 + $0x8] sm:$0xff] }
 0x253   : > { %v1496_v47 = vld [vmem:[#allocation2] sm:$0xff] }
 0x254   : > { %2548 = vmatprep.mubr.msk.bf16.mxu0 %vm1543_vm4, %v1496_v47 }
 0x255   : > { %2549 = vmatmul.mubr.msk.bf16.vlgmr.msra.gmra.mrb[32].mxu0 %vm1543_vm4, %v1497_v48 }
 0x257   : > { %v1156_v49 = vpop.permute.xlu0 %1155 }
 0x258   : > { %1177 = vst.msk [vmem:[#allocation2 + $0x18] sm:$0xff] %vm1173_vm2, %v1156_v49  ;;  %v1154_v50 = vpop.permute.xlu1 %1153 }
 0x259   : > { %1176 = vst.msk [vmem:[#allocation2 + $0x10] sm:$0xff] %vm1173_vm2, %v1154_v50 }
 0x260   : > { %v1470_v51 = vpop.permute.xlu0 %1469 }
 0x261   : > { %1491 = vst.msk [vmem:[#allocation2 + $0x18] sm:$0xff] %vm1487_vm3, %v1470_v51  ;;  %v1468_v52 = vpop.permute.xlu1 %1467 }
 0x262   : > { %1490 = vst.msk [vmem:[#allocation2 + $0x10] sm:$0xff] %vm1487_vm3, %v1468_v52 }
 0x268   : > { %v1499_v54 = vld [vmem:[#allocation2 + $0x18] sm:$0xff] }
 0x269   : > { %v1498_v53 = vld [vmem:[#allocation2 + $0x10] sm:$0xff] }
 0x26a   : > { %2552 = vmatprep.mubr.msk.bf16.mxu0 %vm1543_vm4, %v1498_v53 }
 0x26b   : > { %2553 = vmatmul.mubr.msk.bf16.gmra.mrb[36].mxu0 %vm1543_vm4, %v1499_v54 }
 0x26d   : > { %v1160_v55 = vpop.permute.xlu0 %1159 }
 0x26e   : > { %1179 = vst.msk [vmem:[#allocation2 + $0x28] sm:$0xff] %vm1173_vm2, %v1160_v55  ;;  %v1158_v56 = vpop.permute.xlu1 %1157 }
 0x26f   : > { %1178 = vst.msk [vmem:[#allocation2 + $0x20] sm:$0xff] %vm1173_vm2, %v1158_v56 }
 0x276   : > { %v1474_v57 = vpop.permute.xlu0 %1473 }
 0x277   : > { %1493 = vst.msk [vmem:[#allocation2 + $0x28] sm:$0xff] %vm1487_vm3, %v1474_v57  ;;  %v1472_v58 = vpop.permute.xlu1 %1471 }
 0x278   : > { %1492 = vst.msk [vmem:[#allocation2 + $0x20] sm:$0xff] %vm1487_vm3, %v1472_v58 }
 0x27e   : > { %v1501_v60 = vld [vmem:[#allocation2 + $0x28] sm:$0xff] }
 0x27f   : > { %v1500_v59 = vld [vmem:[#allocation2 + $0x20] sm:$0xff] }
 0x280   : > { %2556 = vmatprep.mubr.msk.bf16.mxu0 %vm1543_vm4, %v1500_v59 }
 0x281   : > { %2557 = vmatmul.mubr.msk.bf16.gmra.mrb[40].mxu0 %vm1543_vm4, %v1501_v60 }
 0x283   : > { %v1164_v61 = vpop.permute.xlu0 %1163 }
 0x284   : > { %1181 = vst.msk [vmem:[#allocation2 + $0x38] sm:$0xff] %vm1173_vm2, %v1164_v61  ;;  %v1162_v62 = vpop.permute.xlu1 %1161 }
 0x285   : > { %1180 = vst.msk [vmem:[#allocation2 + $0x30] sm:$0xff] %vm1173_vm2, %v1162_v62  ;;  %v2305_v62 = vld [vmem:[%s3598_s5] ss:$0 sm:$0xff] }
 0x28c   : > { %v1478_v63 = vpop.permute.xlu0 %1477 }
 0x28d   : > { %1495 = vst.msk [vmem:[#allocation2 + $0x38] sm:$0xff] %vm1487_vm3, %v1478_v63  ;;  %v1476_v0 = vpop.permute.xlu1 %1475 }
 0x28e   : > { %1494 = vst.msk [vmem:[#allocation2 + $0x30] sm:$0xff] %vm1487_vm3, %v1476_v0 }
 0x294   : > { %v1503_v2 = vld [vmem:[#allocation2 + $0x38] sm:$0xff] }
 0x295   : > { %v1502_v1 = vld [vmem:[#allocation2 + $0x30] sm:$0xff] }
 0x296   : > { %2560 = vmatprep.mubr.msk.bf16.mxu0 %vm1543_vm4, %v1502_v1 }
 0x297   : > { %2561 = vmatmul.mubr.msk.bf16.gmra.mrb[44].mxu0 %vm1543_vm4, %v1503_v2 }
 0x328   : > { %v2550_v5 = vpop.f32.mrb[32].mxu0 }
 0x329   : > { %v1611_v45 = vadd.f32 %v2550_v5, %v2292_v4  ;;  %v1602_v6 = vpop.f32.mrb[33].mxu0 }
 0x32a   : > { %v1603_v7 = vadd.f32 %v2292_v4, %v1602_v6  ;;  %v2551_v8 = vpop.f32.mrb[34].mxu0 }
 0x32b   : > { %v1614_v9 = vadd.f32 %v2551_v8, %v2292_v4  ;;  %v1605_v10 = vpop.f32.mrb[35].mxu0  ;;  %v1667_v12 = vmax.f32 %v1611_v45, 0.0 }
 0x32c   : > { %v1606_v11 = vadd.f32 %v2292_v4, %v1605_v10  ;;  %v1665_v14 = vmax.f32 %v1603_v7, 0.0 }
 0x32d   : > { %v1668_v13 = vmax.f32 %v1614_v9, 0.0 }
 0x32e   : > { %v1666_v15 = vmax.f32 %v1606_v11, 0.0 }
 0x32f   : > { %v1682_v16 = vpack.c.bf16 %v1668_v13, %v1667_v12 }
 0x330   : > { %v1681_v17 = vpack.c.bf16 %v1666_v15, %v1665_v14 }
 0x332   : > { %2580 = vmatprep.mubr.bf16.mxu1 %v1681_v17 }
 0x333   : > { %2581 = vmatmul.mubr.bf16.vlgmr.msra.gmra.mrb[32].mxu1 %v1682_v16 }
 0x33e   : > { %v2554_v18 = vpop.f32.mrb[36].mxu0 }
 0x33f   : > { %v1627_v19 = vadd.f32 %v2554_v18, %v2292_v4  ;;  %v1618_v20 = vpop.f32.mrb[37].mxu0 }
 0x340   : > { %v1619_v21 = vadd.f32 %v2292_v4, %v1618_v20  ;;  %v2555_v22 = vpop.f32.mrb[38].mxu0 }
 0x341   : > { %v1630_v23 = vadd.f32 %v2555_v22, %v2292_v4  ;;  %v1621_v24 = vpop.f32.mrb[39].mxu0  ;;  %v1671_v26 = vmax.f32 %v1627_v19, 0.0 }
 0x342   : > { %v1622_v25 = vadd.f32 %v2292_v4, %v1621_v24  ;;  %v1669_v28 = vmax.f32 %v1619_v21, 0.0 }
 0x343   : > { %v1672_v27 = vmax.f32 %v1630_v23, 0.0 }
 0x344   : > { %v1670_v29 = vmax.f32 %v1622_v25, 0.0 }
 0x345   : > { %v1684_v30 = vpack.c.bf16 %v1672_v27, %v1671_v26 }
 0x346   : > { %v1683_v31 = vpack.c.bf16 %v1670_v29, %v1669_v28 }
 0x348   : > { %2584 = vmatprep.mubr.bf16.mxu1 %v1683_v31 }
 0x349   : > { %2585 = vmatmul.mubr.bf16.gmra.mrb[36].mxu1 %v1684_v30 }
 0x354   : > { %v2558_v32 = vpop.f32.mrb[40].mxu0 }
 0x355   : > { %v1643_v33 = vadd.f32 %v2558_v32, %v2292_v4  ;;  %v1634_v34 = vpop.f32.mrb[41].mxu0 }
 0x356   : > { %v1635_v35 = vadd.f32 %v2292_v4, %v1634_v34  ;;  %v2559_v36 = vpop.f32.mrb[42].mxu0 }
 0x357   : > { %v1646_v37 = vadd.f32 %v2559_v36, %v2292_v4  ;;  %v1637_v38 = vpop.f32.mrb[43].mxu0  ;;  %v1675_v40 = vmax.f32 %v1643_v33, 0.0 }
 0x358   : > { %v1638_v39 = vadd.f32 %v2292_v4, %v1637_v38  ;;  %v1673_v43 = vmax.f32 %v1635_v35, 0.0 }
 0x359   : > { %v1676_v42 = vmax.f32 %v1646_v37, 0.0 }
 0x35a   : > { %v1674_v44 = vmax.f32 %v1638_v39, 0.0 }
 0x35b   : > { %v1686_v46 = vpack.c.bf16 %v1676_v42, %v1675_v40 }
 0x35c   : > { %v1685_v47 = vpack.c.bf16 %v1674_v44, %v1673_v43 }
 0x35e   : > { %2588 = vmatprep.mubr.bf16.mxu1 %v1685_v47 }
 0x35f   : > { %2589 = vmatmul.mubr.bf16.gmra.mrb[40].mxu1 %v1686_v46 }
 0x36a   : > { %v2562_v48 = vpop.f32.mrb[44].mxu0 }
 0x36b   : > { %v1659_v49 = vadd.f32 %v2562_v48, %v2292_v4  ;;  %v1650_v50 = vpop.f32.mrb[45].mxu0 }
 0x36c   : > { %v1651_v51 = vadd.f32 %v2292_v4, %v1650_v50  ;;  %v2563_v52 = vpop.f32.mrb[46].mxu0 }
 0x36d   : > { %v1662_v53 = vadd.f32 %v2563_v52, %v2292_v4  ;;  %v1653_v54 = vpop.f32.mrb[47].mxu0  ;;  %v1679_v56 = vmax.f32 %v1659_v49, 0.0 }
 0x36e   : > { %v1654_v55 = vadd.f32 %v2292_v4, %v1653_v54  ;;  %v1677_v58 = vmax.f32 %v1651_v51, 0.0 }
 0x36f   : > { %v1680_v57 = vmax.f32 %v1662_v53, 0.0 }
 0x370   : > { %v1678_v59 = vmax.f32 %v1654_v55, 0.0 }
 0x371   : > { %v1688_v60 = vpack.c.bf16 %v1680_v57, %v1679_v56 }
 0x372   : > { %v1687_v61 = vpack.c.bf16 %v1678_v59, %v1677_v58 }
 0x374   : > { %2592 = vmatprep.mubr.bf16.mxu1 %v1687_v61 }
 0x375   : > { %2593 = vmatmul.mubr.bf16.gmra.mrb[44].mxu1 %v1688_v60 }
 0x406   : > { %v2582_v63 = vpop.f32.mrb[32].mxu1 }
 0x407   : > { %v3376_v0 = vadd.f32 %v2582_v63, %v2305_v62  ;;  %v1794_v1 = vpop.f32.mrb[33].mxu1 }
 0x408   : > { %v3378_v2 = vadd.f32 %v2305_v62, %v1794_v1  ;;  %v2583_v3 = vpop.f32.mrb[34].mxu1 }
 0x409   : > { %1861 = vmax.xlane.f32.xlu0 %v3376_v0  ;;  %v1797_v41 = vpop.f32.mrb[35].mxu1  ;;  %v3384_v5 = vadd.f32 %v2583_v3, %v2305_v62 }
 0x40a   : > { %v3381_v4 = vadd.f32 %v2305_v62, %v1797_v41  ;;  %1857 = vmax.xlane.f32.xlu1 %v3378_v2 }
 0x40d   : > { %1859 = vmax.xlane.f32.xlu0 %v3381_v4 }
 0x40e   : > { %1863 = vmax.xlane.f32.xlu1 %v3384_v5 }
 0x41c   : > { %v2586_v45 = vpop.f32.mrb[36].mxu1 }
 0x41d   : > { %v3388_v6 = vadd.f32 %v2586_v45, %v2305_v62  ;;  %v1810_v7 = vpop.f32.mrb[37].mxu1 }
 0x41e   : > { %v2587_v8 = vpop.f32.mrb[38].mxu1  ;;  %v3393_v11 = vadd.f32 %v2305_v62, %v1810_v7 }
 0x41f   : > { %v3390_v9 = vadd.f32 %v2587_v8, %v2305_v62  ;;  %1869 = vmax.xlane.f32.xlu0 %v3388_v6  ;;  %v1813_v10 = vpop.f32.mrb[39].mxu1 }
 0x420   : > { %v3396_v12 = vadd.f32 %v2305_v62, %v1813_v10 }
 0x421   : > { %1871 = vmax.xlane.f32.xlu1 %v3390_v9 }
 0x423   : > { %1865 = vmax.xlane.f32.xlu0 %v3393_v11 }
 0x425   : > { %1867 = vmax.xlane.f32.xlu1 %v3396_v12 }
 0x432   : > { %v2590_v13 = vpop.f32.mrb[40].mxu1 }
 0x433   : > { %v3400_v14 = vadd.f32 %v2590_v13, %v2305_v62  ;;  %v1826_v15 = vpop.f32.mrb[41].mxu1 }
 0x434   : > { %v2591_v16 = vpop.f32.mrb[42].mxu1  ;;  %v3405_v19 = vadd.f32 %v2305_v62, %v1826_v15 }
 0x435   : > { %v3402_v17 = vadd.f32 %v2591_v16, %v2305_v62  ;;  %1877 = vmax.xlane.f32.xlu0 %v3400_v14  ;;  %v1829_v18 = vpop.f32.mrb[43].mxu1 }
 0x436   : > { %v3408_v20 = vadd.f32 %v2305_v62, %v1829_v18 }
 0x437   : > { %1879 = vmax.xlane.f32.xlu1 %v3402_v17 }
 0x439   : > { %1873 = vmax.xlane.f32.xlu0 %v3405_v19 }
 0x43b   : > { %1875 = vmax.xlane.f32.xlu1 %v3408_v20 }
 0x448   : > { %v2594_v21 = vpop.f32.mrb[44].mxu1 }
 0x449   : > { %v1842_v22 = vpop.f32.mrb[45].mxu1  ;;  %v3417_v27 = vadd.f32 %v2594_v21, %v2305_v62 }
 0x44a   : > { %v3412_v23 = vadd.f32 %v2305_v62, %v1842_v22  ;;  %v2595_v24 = vpop.f32.mrb[46].mxu1 }
 0x44b   : > { %v1845_v25 = vpop.f32.mrb[47].mxu1  ;;  %v3420_v28 = vadd.f32 %v2595_v24, %v2305_v62 }
 0x44c   : > { %v3414_v26 = vadd.f32 %v2305_v62, %v1845_v25  ;;  %1881 = vmax.xlane.f32.xlu0 %v3412_v23 }
 0x44e   : > { %1883 = vmax.xlane.f32.xlu1 %v3414_v26 }
 0x450   : > { %1885 = vmax.xlane.f32.xlu0 %v3417_v27 }
 0x452   : > { %1887 = vmax.xlane.f32.xlu1 %v3420_v28 }
 0x496   : > { %v3424_v29 = vpop.xlane.xlu0 %1861 }
 0x497   : > { %v1891_v30 = vsub.f32 %v3376_v0, %v3424_v29  ;;  %v3428_v31 = vpop.xlane.xlu1 %1857 }
 0x498   : > { %v1889_v32 = vsub.f32 %v3378_v2, %v3428_v31 }
 0x499   : > { %v1909_v33 = vmul.f32 1.442695, %v1891_v30 }
 0x49a   : > { %v3432_v34 = vpop.xlane.xlu0 %1859  ;;  %v1905_v35 = vmul.f32 1.442695, %v1889_v32 }
 0x49b   : > { %2709 = vpow2.f32 %v1909_v33  ;;  %v3434_v36 = vpop.xlane.xlu1 %1863  ;;  %v1890_v37 = vsub.f32 %v3381_v4, %v3432_v34 }
 0x49c   : > { %v1892_v38 = vsub.f32 %v3384_v5, %v3434_v36  ;;  %2711 = vpow2.f32 %v1905_v35 }
 0x49d   : > { %v1907_v40 = vmul.f32 1.442695, %v1890_v37 }
 0x49e   : > { %v1911_v39 = vmul.f32 1.442695, %v1892_v38 }
 0x4a0   : > { %2713 = vpow2.f32 %v1911_v39 }
 0x4a1   : > { %2715 = vpow2.f32 %v1907_v40 }
 0x4a5   : > { %v2710_v42 = vpop.eup %2709 }
 0x4a6   : > { %1941 = vadd.xlane.f32.xlu0 %v2710_v42  ;;  %v2712_v43 = vpop.eup %2711 }
 0x4aa   : > { %v2714_v44 = vpop.eup %2713  ;;  %1937 = vadd.xlane.f32.xlu0 %v2712_v43 }
 0x4ab   : > { %1943 = vadd.xlane.f32.xlu1 %v2714_v44  ;;  %v2716_v48 = vpop.eup %2715 }
 0x4ac   : > { %v3440_v46 = vpop.xlane.xlu0 %1869 }
 0x4ad   : > { %v1895_v47 = vsub.f32 %v3388_v6, %v3440_v46 }
 0x4ae   : > { %v3444_v49 = vpop.xlane.xlu1 %1871 }
 0x4af   : > { %v1917_v50 = vmul.f32 1.442695, %v1895_v47  ;;  %v1896_v51 = vsub.f32 %v3390_v9, %v3444_v49  ;;  %1939 = vadd.xlane.f32.xlu1 %v2716_v48 }
 0x4b0   : > { %v3448_v52 = vpop.xlane.xlu0 %1865 }
 0x4b1   : > { %2717 = vpow2.f32 %v1917_v50  ;;  %v1919_v53 = vmul.f32 1.442695, %v1896_v51  ;;  %v1893_v54 = vsub.f32 %v3393_v11, %v3448_v52 }
 0x4b2   : > { %v3452_v55 = vpop.xlane.xlu1 %1867 }
 0x4b3   : > { %2719 = vpow2.f32 %v1919_v53  ;;  %v1913_v56 = vmul.f32 1.442695, %v1893_v54  ;;  %v1894_v57 = vsub.f32 %v3396_v12, %v3452_v55 }
 0x4b5   : > { %2721 = vpow2.f32 %v1913_v56  ;;  %v1915_v58 = vmul.f32 1.442695, %v1894_v57 }
 0x4b7   : > { %2723 = vpow2.f32 %v1915_v58 }
 0x4bb   : > { %v2718_v59 = vpop.eup %2717 }
 0x4bc   : > { %1949 = vadd.xlane.f32.xlu0 %v2718_v59 }
 0x4bd   : > { %v2720_v60 = vpop.eup %2719 }
 0x4be   : > { %1951 = vadd.xlane.f32.xlu1 %v2720_v60 }
 0x4bf   : > { %v2722_v61 = vpop.eup %2721 }
 0x4c0   : > { %1945 = vadd.xlane.f32.xlu0 %v2722_v61 }
 0x4c1   : > { %v2724_v62 = vpop.eup %2723 }
 0x4c2   : > { %1947 = vadd.xlane.f32.xlu1 %v2724_v62  ;;  %v3456_v63 = vpop.xlane.xlu0 %1877 }
 0x4c3   : > { %v1899_v1 = vsub.f32 %v3400_v14, %v3456_v63 }
 0x4c4   : > { %v3460_v3 = vpop.xlane.xlu1 %1879 }
 0x4c5   : > { %v1925_v41 = vmul.f32 1.442695, %v1899_v1  ;;  %v1900_v45 = vsub.f32 %v3402_v17, %v3460_v3 }
 0x4c6   : > { %v3464_v7 = vpop.xlane.xlu0 %1873 }
 0x4c7   : > { %2725 = vpow2.f32 %v1925_v41  ;;  %v1927_v8 = vmul.f32 1.442695, %v1900_v45  ;;  %v1897_v10 = vsub.f32 %v3405_v19, %v3464_v7 }
 0x4c8   : > { %v3468_v13 = vpop.xlane.xlu1 %1875 }
 0x4c9   : > { %2727 = vpow2.f32 %v1927_v8  ;;  %v1921_v15 = vmul.f32 1.442695, %v1897_v10  ;;  %v1898_v16 = vsub.f32 %v3408_v20, %v3468_v13 }
 0x4cb   : > { %2729 = vpow2.f32 %v1921_v15  ;;  %v1923_v18 = vmul.f32 1.442695, %v1898_v16 }
 0x4cd   : > { %2731 = vpow2.f32 %v1923_v18 }
 0x4d1   : > { %v2726_v21 = vpop.eup %2725 }
 0x4d2   : > { %1957 = vadd.xlane.f32.xlu0 %v2726_v21 }
 0x4d3   : > { %v2728_v22 = vpop.eup %2727 }
 0x4d4   : > { %1959 = vadd.xlane.f32.xlu1 %v2728_v22 }
 0x4d5   : > { %v2730_v24 = vpop.eup %2729 }
 0x4d6   : > { %1953 = vadd.xlane.f32.xlu0 %v2730_v24 }
 0x4d7   : > { %v2732_v25 = vpop.eup %2731 }
 0x4d8   : > { %1955 = vadd.xlane.f32.xlu1 %v2732_v25 }
 0x4d9   : > { %v3472_v30 = vpop.xlane.xlu0 %1881 }
 0x4da   : > { %v1901_v32 = vsub.f32 %v3412_v23, %v3472_v30 }
 0x4db   : > { %v3476_v33 = vpop.xlane.xlu1 %1883 }
 0x4dc   : > { %v1929_v35 = vmul.f32 1.442695, %v1901_v32  ;;  %v1902_v37 = vsub.f32 %v3414_v26, %v3476_v33 }
 0x4dd   : > { %v3480_v38 = vpop.xlane.xlu0 %1885 }
 0x4de   : > { %2733 = vpow2.f32 %v1929_v35  ;;  %v1931_v39 = vmul.f32 1.442695, %v1902_v37  ;;  %v1903_v40 = vsub.f32 %v3417_v27, %v3480_v38 }
 0x4df   : > { %v3484_v42 = vpop.xlane.xlu1 %1887 }
 0x4e0   : > { %2735 = vpow2.f32 %v1931_v39  ;;  %v1933_v43 = vmul.f32 1.442695, %v1903_v40  ;;  %v1904_v44 = vsub.f32 %v3420_v28, %v3484_v42 }
 0x4e2   : > { %2737 = vpow2.f32 %v1933_v43  ;;  %v1935_v47 = vmul.f32 1.442695, %v1904_v44 }
 0x4e4   : > { %2739 = vpow2.f32 %v1935_v47 }
 0x4e8   : > { %v2734_v48 = vpop.eup %2733 }
 0x4e9   : > { %1961 = vadd.xlane.f32.xlu0 %v2734_v48 }
 0x4ea   : > { %v2736_v50 = vpop.eup %2735 }
 0x4eb   : > { %1963 = vadd.xlane.f32.xlu1 %v2736_v50 }
 0x4ec   : > { %v2738_v51 = vpop.eup %2737 }
 0x4ed   : > { %1965 = vadd.xlane.f32.xlu0 %v2738_v51 }
 0x4ee   : > { %v2740_v53 = vpop.eup %2739 }
 0x4ef   : > { %1967 = vadd.xlane.f32.xlu1 %v2740_v53 }
 0x533   : > { %v1942_v54 = vpop.xlane.xlu0 %1941 }
 0x534   : > { %2741 = vlog2.f32 %v1942_v54 }
 0x537   : > { %v1938_v56 = vpop.xlane.xlu0 %1937 }
 0x538   : > { %2743 = vlog2.f32 %v1938_v56  ;;  %v1944_v57 = vpop.xlane.xlu1 %1943 }
 0x539   : > { %2745 = vlog2.f32 %v1944_v57 }
 0x53c   : > { %v1940_v58 = vpop.xlane.xlu1 %1939 }
 0x53d   : > { %2747 = vlog2.f32 %v1940_v58 }
 0x53e   : > { %v2742_v59 = vpop.eup %2741 }
 0x53f   : > { %v1974_v60 = vmul.f32 0.6931472, %v2742_v59 }
 0x541   : > { %v2003_v61 = vadd.f32 %v1974_v60, %v3424_v29 }
 0x542   : > { %v2744_v62 = vpop.eup %2743 }
 0x543   : > { %v2746_v1 = vpop.eup %2745  ;;  %v2019_v41 = vsub.f32 %v3376_v0, %v2003_v61  ;;  %v1970_v45 = vmul.f32 0.6931472, %v2744_v62 }
 0x544   : > { %v1976_v8 = vmul.f32 0.6931472, %v2746_v1 }
 0x545   : > { %2035 = vst [vmem:[%s3493_s28 + $0x10] sm:$0xff] %v2019_v41  ;;  %v2001_v10 = vadd.f32 %v1970_v45, %v3428_v31 }
 0x546   : > { %v2004_v15 = vadd.f32 %v1976_v8, %v3434_v36 }
 0x547   : > { %v2748_v16 = vpop.eup %2747  ;;  %v2017_v29 = vsub.f32 %v3378_v2, %v2001_v10 }
 0x548   : > { %v2020_v18 = vsub.f32 %v3384_v5, %v2004_v15  ;;  %v1972_v21 = vmul.f32 0.6931472, %v2748_v16 }
 0x549   : > { %2033 = vst [vmem:[%s3493_s28] sm:$0xff] %v2017_v29  ;;  %v1950_v0 = vpop.xlane.xlu0 %1949 }
 0x54a   : > { %2036 = vst [vmem:[%s3493_s28 + $0x18] sm:$0xff] %v2020_v18  ;;  %v2002_v22 = vadd.f32 %v1972_v21, %v3432_v34  ;;  %2749 = vlog2.f32 %v1950_v0 }
 0x54b   : > { %v1952_v24 = vpop.xlane.xlu1 %1951 }
 0x54c   : > { %v2018_v25 = vsub.f32 %v3381_v4, %v2002_v22  ;;  %2751 = vlog2.f32 %v1952_v24 }
 0x54d   : > { %v1946_v31 = vpop.xlane.xlu0 %1945 }
 0x54e   : > { %2034 = vst [vmem:[%s3493_s28 + $0x8] sm:$0xff] %v2018_v25  ;;  %2753 = vlog2.f32 %v1946_v31 }
 0x54f   : > { %v1948_v36 = vpop.xlane.xlu1 %1947 }
 0x550   : > { %2755 = vlog2.f32 %v1948_v36 }
 0x554   : > { %v2750_v2 = vpop.eup %2749 }
 0x555   : > { %v1982_v5 = vmul.f32 0.6931472, %v2750_v2 }
 0x556   : > { %v2752_v32 = vpop.eup %2751 }
 0x557   : > { %v2007_v35 = vadd.f32 %v1982_v5, %v3440_v46  ;;  %v1984_v37 = vmul.f32 0.6931472, %v2752_v32 }
 0x558   : > { %v2754_v34 = vpop.eup %2753 }
 0x559   : > { %v2023_v39 = vsub.f32 %v3388_v6, %v2007_v35  ;;  %v2008_v4 = vadd.f32 %v1984_v37, %v3444_v49  ;;  %v1978_v40 = vmul.f32 0.6931472, %v2754_v34 }
 0x55a   : > { %v2756_v43 = vpop.eup %2755 }
 0x55b   : > { %2039 = vst [vmem:[%s3493_s28 + $0x30] sm:$0xff] %v2023_v39  ;;  %v2024_v44 = vsub.f32 %v3390_v9, %v2008_v4  ;;  %v2005_v47 = vadd.f32 %v1978_v40, %v3448_v52  ;;  %v1980_v48 = vmul.f32 0.6931472, %v2756_v43 }
 0x55d   : > { %2040 = vst [vmem:[%s3493_s28 + $0x38] sm:$0xff] %v2024_v44  ;;  %v2021_v50 = vsub.f32 %v3393_v11, %v2005_v47  ;;  %v2006_v46 = vadd.f32 %v1980_v48, %v3452_v55 }
 0x55f   : > { %2037 = vst [vmem:[%s3493_s28 + $0x20] sm:$0xff] %v2021_v50  ;;  %v2022_v51 = vsub.f32 %v3396_v12, %v2006_v46  ;;  %v1958_v53 = vpop.xlane.xlu0 %1957 }
 0x560   : > { %2757 = vlog2.f32 %v1958_v53 }
 0x561   : > { %2038 = vst [vmem:[%s3493_s28 + $0x28] sm:$0xff] %v2022_v51  ;;  %v1960_v6 = vpop.xlane.xlu1 %1959 }
 0x562   : > { %2759 = vlog2.f32 %v1960_v6 }
 0x563   : > { %v1954_v49 = vpop.xlane.xlu0 %1953 }
 0x564   : > { %2761 = vlog2.f32 %v1954_v49 }
 0x565   : > { %v1956_v9 = vpop.xlane.xlu1 %1955 }
 0x566   : > { %2763 = vlog2.f32 %v1956_v9 }
 0x56a   : > { %v2758_v52 = vpop.eup %2757 }
 0x56b   : > { %v1990_v54 = vmul.f32 0.6931472, %v2758_v52 }
 0x56c   : > { %v2760_v11 = vpop.eup %2759 }
 0x56d   : > { %v2011_v55 = vadd.f32 %v1990_v54, %v3456_v63  ;;  %v1992_v56 = vmul.f32 0.6931472, %v2760_v11 }
 0x56e   : > { %v2762_v12 = vpop.eup %2761 }
 0x56f   : > { %v2027_v57 = vsub.f32 %v3400_v14, %v2011_v55  ;;  %v2012_v58 = vadd.f32 %v1992_v56, %v3460_v3  ;;  %v1986_v59 = vmul.f32 0.6931472, %v2762_v12 }
 0x570   : > { %v2764_v60 = vpop.eup %2763 }
 0x571   : > { %2043 = vst [vmem:[%s3493_s28 + $0x50] sm:$0xff] %v2027_v57  ;;  %v2028_v61 = vsub.f32 %v3402_v17, %v2012_v58  ;;  %v2009_v62 = vadd.f32 %v1986_v59, %v3464_v7  ;;  %v1988_v1 = vmul.f32 0.6931472, %v2764_v60 }
 0x573   : > { %2044 = vst [vmem:[%s3493_s28 + $0x58] sm:$0xff] %v2028_v61  ;;  %v2025_v41 = vsub.f32 %v3405_v19, %v2009_v62  ;;  %v2010_v63 = vadd.f32 %v1988_v1, %v3468_v13 }
 0x575   : > { %2041 = vst [vmem:[%s3493_s28 + $0x40] sm:$0xff] %v2025_v41  ;;  %v2026_v45 = vsub.f32 %v3408_v20, %v2010_v63 }
 0x576   : > { %v1962_v8 = vpop.xlane.xlu0 %1961 }
 0x577   : > { %2042 = vst [vmem:[%s3493_s28 + $0x48] sm:$0xff] %v2026_v45  ;;  %2765 = vlog2.f32 %v1962_v8 }
 0x578   : > { %v1964_v14 = vpop.xlane.xlu1 %1963 }
 0x579   : > { %2767 = vlog2.f32 %v1964_v14 }
 0x57a   : > { %v1966_v3 = vpop.xlane.xlu0 %1965 }
 0x57b   : > { %2769 = vlog2.f32 %v1966_v3 }
 0x57c   : > { %v1968_v17 = vpop.xlane.xlu1 %1967 }
 0x57d   : > { %2771 = vlog2.f32 %v1968_v17 }
 0x581   : > { %v2766_v7 = vpop.eup %2765 }
 0x582   : > { %v1994_v19 = vmul.f32 0.6931472, %v2766_v7 }
 0x583   : > { %v2768_v10 = vpop.eup %2767 }
 0x584   : > { %v2013_v13 = vadd.f32 %v1994_v19, %v3472_v30  ;;  %v1996_v15 = vmul.f32 0.6931472, %v2768_v10 }
 0x585   : > { %v2770_v20 = vpop.eup %2769 }
 0x586   : > { %v2029_v16 = vsub.f32 %v3412_v23, %v2013_v13  ;;  %v2014_v29 = vadd.f32 %v1996_v15, %v3476_v33  ;;  %v1998_v18 = vmul.f32 0.6931472, %v2770_v20 }
 0x587   : > { %v2772_v21 = vpop.eup %2771 }
 0x588   : > { %2045 = vst [vmem:[%s3493_s28 + $0x60] sm:$0xff] %v2029_v16  ;;  %v2030_v0 = vsub.f32 %v3414_v26, %v2014_v29  ;;  %v2015_v22 = vadd.f32 %v1998_v18, %v3480_v38  ;;  %v2000_v24 = vmul.f32 0.6931472, %v2772_v21 }
 0x58a   : > { %2046 = vst [vmem:[%s3493_s28 + $0x68] sm:$0xff] %v2030_v0  ;;  %v2031_v30 = vsub.f32 %v3417_v27, %v2015_v22  ;;  %v2016_v23 = vadd.f32 %v2000_v24, %v3484_v42 }
 0x58c   : > { %2047 = vst [vmem:[%s3493_s28 + $0x70] sm:$0xff] %v2031_v30  ;;  %v2032_v26 = vsub.f32 %v3420_v28, %v2016_v23 }
 0x58e   : > { %2048 = vst [vmem:[%s3493_s28 + $0x78] sm:$0xff] %v2032_v26 }
 0x58f   : > { %2786 = shalt.err (!%p2783_p3)
}
 0x590   : > { %s2787_s17 = scalar_lea.hbm %s3543_s12, 2048  ;;  %s2791_s26 = scalar_lea.hbm %s3599_s6, 4096 }
 0x591   : > { %p2788_p4 = scmp.ne.s32.totalorder %s3543_s12, %s2787_s17  ;;  %p2792_p9 = scmp.lt.u32.totalorder %s3543_s12, %s3599_s6 }
 0x592   : > { %p2793_p10 = scmp.lt.u32.totalorder %s2791_s26, %s2787_s17  ;;  %p2795_p12 = scmp.lt.u32.totalorder %s2787_s17, %s3543_s12 }
 0x593   : > { %p2789_p7 = pnand %p2788_p4, %p2921_p5 }
 0x594   : > { %p2794_p11 = por %p2793_p10, %p2792_p9 }
 0x595   : > { %p2790_p8 = pneg %p2789_p7 }
 0x596   : > { %p2796_p13 = por %p2795_p12, %p2794_p11 }
 0x598   : > { %p2797_p0 = pnand %p2796_p13, %p2790_p8 }
 0x59a   : > { %2800 = shalt.err (!%p2797_p0)
}
 0x59b   : > { %s2846_s29 = smov 128   ;;  %s2847_s10 = smov 8  }
 0x59c   : > { %2596 = dma.vmem_to_hbm [thread:$0]  (%p2921_p5), %s3545_s9, 2048, %s3543_s12, %s3552_s25, %s2846_s29, %s2846_s29, %s2847_s10  }
 0x59d PF: > { %p2602_p1 = scmp.ge.s32.totalorder %s2835_s24, 2  ;;  %s2078_s11 = sand.u32 1, %s2823_s21  }
 0x59e   : > { %s2079_s13 = scalar_lea.sflag [#allocation4], %s2078_s11 }
 0x59f   : > { %p2599_p2 = pnand %p2602_p1, %p2925_p6 }
 0x5a1   : > { %2818 = dma.done.wait (!%p2599_p2), %s2079_s13, 2048  }
 0x5a2   : > { %2820 = vsyncadd (!%p2599_p2), %s2079_s13, 4294965248  ;;  %p16_p3 = scmp.ge.s32.totalorder %s2908_s27, 4   ;;  %s3602_s21 = smov %s2827_s22 }
 0x5a3   : > { %s3603_s22 = smov %s2831_s23  ;;  %s3604_s23 = smov %s2919_s30 }
 0x5a4   : > { %s3605_s24 = smov %s2908_s27  ;;  %18 = sbr.rel (!%p16_p3) target bundleno = 3 (0x3), region = 79 }
 0x5ab   :  { %2084 = vsyncpa [#allocation4], 1 }
 0x5ac   :  { %2086 = vsyncpa [#allocation4 + $0x1], 1 }

</bundles_post_ra>
